<compile_context>
chip_gen: v7x
topology: tpu7x:2x2x1
jax: 0.10.0
libtpu: 0.0.40
codegen_flags: <defaults>
</compile_context>

<pallas_src>
import jax
import jax.numpy as jnp
import numpy as np
from jax.experimental import pallas as pl
from jax.experimental.pallas import tpu as pltpu

# ---- small, module-consistent shapes -----------------------------------------
NUM_UNROLL = 4
NUM_LAYERS = 2
RNN = 32          # rnn_size
INPUT = 16        # input_size
OUTPUT = 32       # output_size
BATCH = 8
BN_EPS = 1e-5
LANE = 128        # lane width for the padded layer-0 projection blocks


# ---- Pallas kernel (single invocation, fully unrolled recurrence) -------------
def _gru_net_kernel(x_ref, h0_ref, wi0_ref, wir_ref, wh_ref, b_ref, wp_ref, bp_ref,
                    pred_ref):
    R = RNN
    x_bf = x_ref[...].astype(jnp.bfloat16)                             # (B, INPUT)

    # Layer-0 input projection for ALL unroll steps at once (x is step-invariant):
    # one (B,INPUT)x(INPUT, NU*128) single-pass bf16 MXU matmul; each per-step block
    # is padded to 128 lanes so the slices below are vreg-aligned.
    i2h0_all = jnp.dot(x_bf, wi0_ref[...],
                       preferred_element_type=jnp.float32)             # (B, NU*128) f32

    h_f32 = [h0_ref[L] for L in range(NUM_LAYERS)]                     # f32 carries
    h_bf = [h_f32[L].astype(jnp.bfloat16) for L in range(NUM_LAYERS)]  # dot operands
    last_outputs = []                                                  # layer-1 outputs

    for t in range(NUM_UNROLL):                                        # static unroll
        inp_bf = None
        for L in range(NUM_LAYERS):                                    # static layer loop
            prev_h = h_f32[L]
            if L == 0:
                # lane-aligned slice: starts at a 128-lane boundary
                i2h = i2h0_all[:, t * LANE: t * LANE + 3 * R]          # (B, 3R)
            else:
                i2h = jnp.dot(inp_bf, wir_ref[t, L - 1],
                              preferred_element_type=jnp.float32)      # (B, 3R)
            h2h = jnp.dot(h_bf[L], wh_ref[t, L],
                          preferred_element_type=jnp.float32)          # (B, 3R)

            # packed, batch-broadcast biases:
            # [ b_i+b_h for gates z,r (2R) | b_i gate3 (R) | b_h gate3 (R) ]
            b = b_ref[t, L]                                            # (B, 4R) f32

            i2h_b = i2h + b[:, :3 * R]                                 # full-width add
            # fused z/r gates: one sigmoid over 2R lanes (f32 gate math throughout)
            zr = jax.nn.sigmoid(i2h_b[:, :2 * R] + h2h[:, :2 * R])
            zt = zr[:, :R]
            rt = zr[:, R:2 * R]
            hc = jnp.tanh(i2h_b[:, 2 * R:] + rt * (h2h[:, 2 * R:] + b[:, 3 * R:]))

            ht = (1.0 - zt) * prev_h + zt * hc                         # (B, R) f32
            h_f32[L] = ht
            ht_bf = ht.astype(jnp.bfloat16)                            # cast once, reuse
            h_bf[L] = ht_bf
            inp_bf = ht_bf
        last_outputs.append(inp_bf)

    # fused prediction head: cat(last-layer outputs) @ Wp_folded, one K=NU*R=128 matmul
    h_cat = jnp.concatenate(last_outputs, axis=1)                      # (B, NU*R) bf16
    acc = jnp.dot(h_cat, wp_ref[...], preferred_element_type=jnp.float32)
    pred_ref[...] = (acc + bp_ref[...]).astype(pred_ref.dtype)


# ---- wrapper: BN folding + packing + bf16 cast, then one pallas_call ------------
def gru_net_forward(x, init_states_input,
                    wi0, bi0, wir, bir, wh, bh, gam, bet,
                    wp, bp, pgam, pbet):
    """x: (B, INPUT); init_states_input: (B, NUM_LAYERS*2*RNN)."""
    B = x.shape[0]
    R, NU, NL = RNN, NUM_UNROLL, NUM_LAYERS
    inv = jnp.float32(1.0 / np.sqrt(1.0 + BN_EPS))    # BN eval: running mean=0, var=1

    # --- fold BatchNorm (eval) + biases into the weights (affine => exact) ---
    scale = inv * gam                                  # (NU, NL, 1, 3R)
    wi0_f = wi0 * scale[:, 0]                          # (NU, INPUT, 3R)
    bi0_f = bi0 * scale[:, 0] + bet[:, 0]              # (NU, 1, 3R)
    wir_f = wir * scale[:, 1:]                         # (NU, NL-1, R, 3R)
    bir_f = bir * scale[:, 1:] + bet[:, 1:]            # (NU, NL-1, 1, 3R)
    wh_f = wh * scale                                  # (NU, NL, R, 3R)
    bh_f = bh * scale + bet                            # (NU, NL, 1, 3R)

    # step-invariant layer-0 weights, each per-step 3R block padded to 128 lanes:
    # (INPUT, NU*128), bf16 for a single-pass MXU matmul.
    wi0_t = jnp.transpose(wi0_f, (1, 0, 2))                        # (INPUT, NU, 3R)
    wi0_pad = jnp.pad(wi0_t, ((0, 0), (0, 0), (0, LANE - 3 * R)))  # (INPUT, NU, 128)
    wi0_all = wi0_pad.reshape(x.shape[1], NU * LANE).astype(jnp.bfloat16)

    wir_b = wir_f.astype(jnp.bfloat16)                             # (NU, NL-1, R, 3R)
    wh_b = wh_f.astype(jnp.bfloat16)                               # (NU, NL, R, 3R)

    # pack per-(step, layer) biases and pre-broadcast over batch: (NU, NL, B, 4R)
    bias_i = jnp.concatenate([bi0_f[:, None], bir_f], axis=1)      # (NU, NL, 1, 3R)
    bias_h = bh_f                                                  # (NU, NL, 1, 3R)
    b_packed = jnp.concatenate(
        [bias_i[..., :2 * R] + bias_h[..., :2 * R],                # z/r gate biases summed
         bias_i[..., 2 * R:],                                      # gate-3 input bias
         bias_h[..., 2 * R:]],                                     # gate-3 hidden bias
        axis=-1)                                                   # (NU, NL, 1, 4R)
    b_packed = jnp.broadcast_to(b_packed, (NU, NL, B, 4 * R)).astype(jnp.float32)

    # fused prediction head: BN fold, reshape to one (NU*R, OUT) matmul weight (bf16)
    wp_f = (wp * (inv * pgam)).reshape(NU * R, OUTPUT).astype(jnp.bfloat16)
    bp_f = bp * inv * pgam + pbet                                  # (1, OUT) f32

    # initial hidden states (same slicing BuildGRUUnrollNet does: even chunks)
    init_states = init_states_input.reshape(B, NL * 2, R)
    h0 = jnp.transpose(init_states[:, ::2, :], (1, 0, 2))          # (NL, B, R)

    grid_spec = pl.GridSpec(
        grid=(1,),
        in_specs=[
            pl.BlockSpec((B, INPUT), lambda i: (0, 0)),                      # x
            pl.BlockSpec((NL, B, R), lambda i: (0, 0, 0)),                   # h0
            pl.BlockSpec((INPUT, NU * LANE), lambda i: (0, 0)),              # wi0_all (bf16)
            pl.BlockSpec((NU, NL - 1, R, 3 * R), lambda i: (0, 0, 0, 0)),    # wir (bf16)
            pl.BlockSpec((NU, NL, R, 3 * R), lambda i: (0, 0, 0, 0)),        # wh (bf16)
            pl.BlockSpec((NU, NL, B, 4 * R), lambda i: (0, 0, 0, 0)),        # packed biases
            pl.BlockSpec((NU * R, OUTPUT), lambda i: (0, 0)),                # wp fused (bf16)
            pl.BlockSpec((1, OUTPUT), lambda i: (0, 0)),                     # bp (folded)
        ],
        out_specs=pl.BlockSpec((B, OUTPUT), lambda i: (0, 0)),
    )
    return pl.pallas_call(
        _gru_net_kernel,
        out_shape=jax.ShapeDtypeStruct((B, OUTPUT), jnp.float32),
        grid_spec=grid_spec,
        compiler_params=pltpu.CompilerParams(dimension_semantics=("arbitrary",)),
    )(x, h0, wi0_all, wir_b, wh_b, b_packed, wp_f, bp_f)


# ---- pure-JAX reference (original, un-folded math, pinned f32 precision) --------
def reference(x, init_states_input,
              wi0, bi0, wir, bir, wh, bh, gam, bet, wp, bp, pgam, pbet):
    hp = jax.lax.Precision.HIGHEST
    B = x.shape[0]
    inv = 1.0 / np.sqrt(1.0 + BN_EPS)
    init_states = init_states_input.reshape(B, NUM_LAYERS * 2, RNN)
    h = [init_states[:, 2 * i, :] for i in range(NUM_LAYERS)]
    acc = jnp.zeros((B, OUTPUT), jnp.float32)
    for t in range(NUM_UNROLL):
        inp = x
        for L in range(NUM_LAYERS):
            if L == 0:
                w_i, b_i = wi0[t], bi0[t]
            else:
                w_i, b_i = wir[t, L - 1], bir[t, L - 1]
            i2h = (jnp.dot(inp, w_i, precision=hp) + b_i) * inv * gam[t, L] + bet[t, L]
            h2h = (jnp.dot(h[L], wh[t, L], precision=hp) + bh[t, L]) * inv * gam[t, L] + bet[t, L]
            wx1, wx2, wx3 = jnp.split(i2h, 3, axis=1)
            uh1, uh2, uh3 = jnp.split(h2h, 3, axis=1)
            zt = jax.nn.sigmoid(wx1 + uh1)
            rt = jax.nn.sigmoid(wx2 + uh2)
            hc = jnp.tanh(wx3 + rt * uh3)
            ht = (1.0 - zt) * h[L] + zt * hc
            h[L] = ht
            inp = ht
        acc = acc + jnp.dot(inp, wp[t], precision=hp)
    return (acc + bp) * inv * pgam + pbet


# ---- deterministic parameter init + run ----------------------------------------
if __name__ == "__main__":
    key = jax.random.PRNGKey(0)
    ks = jax.random.split(key, 16)

    def nrm(k, shape, scale=0.1):
        return scale * jax.random.normal(k, shape, dtype=jnp.float32)

    # Per-unroll, per-layer parameters (PyTorch Linear weights pre-transposed to (in, out)).
    wi0 = nrm(ks[0], (NUM_UNROLL, INPUT, 3 * RNN))                       # l_i2h[0]
    bi0 = nrm(ks[1], (NUM_UNROLL, 1, 3 * RNN))
    wir = nrm(ks[2], (NUM_UNROLL, NUM_LAYERS - 1, RNN, 3 * RNN))         # l_i2h[1:]
    bir = nrm(ks[3], (NUM_UNROLL, NUM_LAYERS - 1, 1, 3 * RNN))
    wh = nrm(ks[4], (NUM_UNROLL, NUM_LAYERS, RNN, 3 * RNN))              # l_h2h
    bh = nrm(ks[5], (NUM_UNROLL, NUM_LAYERS, 1, 3 * RNN))
    gam = 1.0 + nrm(ks[6], (NUM_UNROLL, NUM_LAYERS, 1, 3 * RNN))         # l_bn gamma
    bet = nrm(ks[7], (NUM_UNROLL, NUM_LAYERS, 1, 3 * RNN))               # l_bn beta
    # l_pred_l: torch weight (OUTPUT, NUM_UNROLL*RNN) -> transpose -> chunk per step.
    wp = nrm(ks[8], (NUM_UNROLL, RNN, OUTPUT))
    bp = nrm(ks[9], (1, OUTPUT))
    pgam = 1.0 + nrm(ks[10], (1, OUTPUT))                                # l_pred_bn gamma
    pbet = nrm(ks[11], (1, OUTPUT))                                      # l_pred_bn beta

    x = jax.random.normal(ks[12], (BATCH, INPUT), dtype=jnp.float32)
    init_states_input = jax.random.normal(
        ks[13], (BATCH, NUM_LAYERS * 2 * RNN), dtype=jnp.float32)

    params = (wi0, bi0, wir, bir, wh, bh, gam, bet, wp, bp, pgam, pbet)

    pred = jax.jit(gru_net_forward)(x, init_states_input, *params)
    pred = jax.block_until_ready(pred)

    ref = jax.block_until_ready(reference(x, init_states_input, *params))
    # Tolerance accounts for the deliberate single-pass bf16 MXU operands in the kernel
    # vs the pinned-HIGHEST f32 reference (bf16 operand rounding ~2^-9 relative,
    # propagated through the 4-step / 2-layer recurrence).
    if not np.allclose(np.asarray(pred), np.asarray(ref), rtol=2e-2, atol=2e-2):
        raise AssertionError(
            f"mismatch: max abs err {np.max(np.abs(np.asarray(pred) - np.asarray(ref)))}")

    print("KERNEL_OK")
</pallas_src>

<mosaic_0001>
module attributes {stable_mosaic.version = 11 : i64} {
  func.func @_gru_net_kernel(%arg0: i32, %arg1: memref<8x16xf32, #tpu.memory_space<vmem>>, %arg2: memref<2x8x32xf32, #tpu.memory_space<vmem>>, %arg3: memref<16x512xbf16, #tpu.memory_space<vmem>>, %arg4: memref<4x1x32x96xbf16, #tpu.memory_space<vmem>>, %arg5: memref<4x2x32x96xbf16, #tpu.memory_space<vmem>>, %arg6: memref<4x2x8x128xf32, #tpu.memory_space<vmem>>, %arg7: memref<128x32xbf16, #tpu.memory_space<vmem>>, %arg8: memref<1x32xf32, #tpu.memory_space<vmem>>, %arg9: memref<8x32xf32, #tpu.memory_space<vmem>>) attributes {dimension_semantics = [#tpu.dimension_semantics<arbitrary>], iteration_bounds = array<i64: 1>, scalar_prefetch = 0 : i64, scratch_operands = 0 : i64, tpu.core_type = #tpu.core_type<tc>, window_params = [{pipeline_mode = #tpu.pipeline_mode<synchronous>, transform_indices = @transform_0, window_bounds = array<i64: 8, 16>}, {pipeline_mode = #tpu.pipeline_mode<synchronous>, transform_indices = @transform_1, window_bounds = array<i64: 2, 8, 32>}, {pipeline_mode = #tpu.pipeline_mode<synchronous>, transform_indices = @transform_2, window_bounds = array<i64: 16, 512>}, {pipeline_mode = #tpu.pipeline_mode<synchronous>, transform_indices = @transform_3, window_bounds = array<i64: 4, 1, 32, 96>}, {pipeline_mode = #tpu.pipeline_mode<synchronous>, transform_indices = @transform_4, window_bounds = array<i64: 4, 2, 32, 96>}, {pipeline_mode = #tpu.pipeline_mode<synchronous>, transform_indices = @transform_5, window_bounds = array<i64: 4, 2, 8, 128>}, {pipeline_mode = #tpu.pipeline_mode<synchronous>, transform_indices = @transform_6, window_bounds = array<i64: 128, 32>}, {pipeline_mode = #tpu.pipeline_mode<synchronous>, transform_indices = @transform_7, window_bounds = array<i64: 1, 32>}, {pipeline_mode = #tpu.pipeline_mode<synchronous>, transform_indices = @transform_8, window_bounds = array<i64: 8, 32>}]} {
    %c0 = arith.constant 0 : index
    %c0_0 = arith.constant 0 : index
    %0 = vector.load %arg1[%c0, %c0_0] : memref<8x16xf32, #tpu.memory_space<vmem>>, vector<8x16xf32>
    %1 = arith.truncf %0 : vector<8x16xf32> to vector<8x16xbf16>
    %c0_1 = arith.constant 0 : index
    %c0_2 = arith.constant 0 : index
    %2 = vector.load %arg3[%c0_1, %c0_2] : memref<16x512xbf16, #tpu.memory_space<vmem>>, vector<16x512xbf16>
    %cst = arith.constant dense<0.000000e+00> : vector<8x512xf32>
    %3 = tpu.matmul %1, %2, %cst {dimension_numbers = #tpu.dot_dimension_numbers<[1], [0], [0], [1], [0, 0, 1, 1], [], []>} : vector<8x16xbf16>, vector<16x512xbf16>, vector<8x512xf32> -> vector<8x512xf32>
    %c0_3 = arith.constant 0 : index
    %c0_4 = arith.constant 0 : index
    %c0_5 = arith.constant 0 : index
    %4 = vector.load %arg2[%c0_3, %c0_4, %c0_5] : memref<2x8x32xf32, #tpu.memory_space<vmem>>, vector<1x8x32xf32>
    %5 = vector.shape_cast %4 : vector<1x8x32xf32> to vector<8x32xf32>
    %c1 = arith.constant 1 : index
    %c0_6 = arith.constant 0 : index
    %c0_7 = arith.constant 0 : index
    %6 = vector.load %arg2[%c1, %c0_6, %c0_7] : memref<2x8x32xf32, #tpu.memory_space<vmem>>, vector<1x8x32xf32>
    %7 = vector.shape_cast %6 : vector<1x8x32xf32> to vector<8x32xf32>
    %8 = arith.truncf %5 : vector<8x32xf32> to vector<8x32xbf16>
    %9 = arith.truncf %7 : vector<8x32xf32> to vector<8x32xbf16>
    %10 = vector.extract_strided_slice %3 {offsets = [0, 0], sizes = [8, 96], strides = [1, 1]} : vector<8x512xf32> to vector<8x96xf32>
    %c0_8 = arith.constant 0 : index
    %c0_9 = arith.constant 0 : index
    %c0_10 = arith.constant 0 : index
    %c0_11 = arith.constant 0 : index
    %11 = vector.load %arg5[%c0_8, %c0_9, %c0_10, %c0_11] : memref<4x2x32x96xbf16, #tpu.memory_space<vmem>>, vector<1x1x32x96xbf16>
    %12 = vector.shape_cast %11 : vector<1x1x32x96xbf16> to vector<32x96xbf16>
    %cst_12 = arith.constant dense<0.000000e+00> : vector<8x96xf32>
    %13 = tpu.matmul %8, %12, %cst_12 {dimension_numbers = #tpu.dot_dimension_numbers<[1], [0], [0], [1], [0, 0, 1, 1], [], []>} : vector<8x32xbf16>, vector<32x96xbf16>, vector<8x96xf32> -> vector<8x96xf32>
    %c0_13 = arith.constant 0 : index
    %c0_14 = arith.constant 0 : index
    %c0_15 = arith.constant 0 : index
    %c0_16 = arith.constant 0 : index
    %14 = vector.load %arg6[%c0_13, %c0_14, %c0_15, %c0_16] : memref<4x2x8x128xf32, #tpu.memory_space<vmem>>, vector<1x1x8x128xf32>
    %15 = vector.shape_cast %14 : vector<1x1x8x128xf32> to vector<8x128xf32>
    %16 = vector.extract_strided_slice %15 {offsets = [0, 0], sizes = [8, 96], strides = [1, 1]} : vector<8x128xf32> to vector<8x96xf32>
    %17 = arith.addf %10, %16 : vector<8x96xf32>
    %18 = vector.extract_strided_slice %17 {offsets = [0, 0], sizes = [8, 64], strides = [1, 1]} : vector<8x96xf32> to vector<8x64xf32>
    %19 = vector.extract_strided_slice %13 {offsets = [0, 0], sizes = [8, 64], strides = [1, 1]} : vector<8x96xf32> to vector<8x64xf32>
    %20 = arith.addf %18, %19 : vector<8x64xf32>
    %21 = arith.negf %20 : vector<8x64xf32>
    %22 = math.exp %21 : vector<8x64xf32>
    %cst_17 = arith.constant 1.000000e+00 : f32
    %23 = vector.broadcast %cst_17 : f32 to vector<8x64xf32>
    %24 = arith.addf %23, %22 : vector<8x64xf32>
    %25 = arith.divf %23, %24 : vector<8x64xf32>
    %26 = vector.extract_strided_slice %25 {offsets = [0, 0], sizes = [8, 32], strides = [1, 1]} : vector<8x64xf32> to vector<8x32xf32>
    %27 = vector.extract_strided_slice %25 {offsets = [0, 32], sizes = [8, 32], strides = [1, 1]} : vector<8x64xf32> to vector<8x32xf32>
    %28 = vector.extract_strided_slice %17 {offsets = [0, 64], sizes = [8, 32], strides = [1, 1]} : vector<8x96xf32> to vector<8x32xf32>
    %29 = vector.extract_strided_slice %13 {offsets = [0, 64], sizes = [8, 32], strides = [1, 1]} : vector<8x96xf32> to vector<8x32xf32>
    %30 = vector.extract_strided_slice %15 {offsets = [0, 96], sizes = [8, 32], strides = [1, 1]} : vector<8x128xf32> to vector<8x32xf32>
    %31 = arith.addf %29, %30 : vector<8x32xf32>
    %32 = arith.mulf %27, %31 : vector<8x32xf32>
    %33 = arith.addf %28, %32 : vector<8x32xf32>
    %34 = math.tanh %33 : vector<8x32xf32>
    %cst_18 = arith.constant 1.000000e+00 : f32
    %35 = vector.broadcast %cst_18 : f32 to vector<8x32xf32>
    %36 = arith.subf %35, %26 : vector<8x32xf32>
    %37 = arith.mulf %36, %5 : vector<8x32xf32>
    %38 = arith.mulf %26, %34 : vector<8x32xf32>
    %39 = arith.addf %37, %38 : vector<8x32xf32>
    %40 = arith.truncf %39 : vector<8x32xf32> to vector<8x32xbf16>
    %c0_19 = arith.constant 0 : index
    %c0_20 = arith.constant 0 : index
    %c0_21 = arith.constant 0 : index
    %c0_22 = arith.constant 0 : index
    %41 = vector.load %arg4[%c0_19, %c0_20, %c0_21, %c0_22] : memref<4x1x32x96xbf16, #tpu.memory_space<vmem>>, vector<1x1x32x96xbf16>
    %42 = vector.shape_cast %41 : vector<1x1x32x96xbf16> to vector<32x96xbf16>
    %cst_23 = arith.constant dense<0.000000e+00> : vector<8x96xf32>
    %43 = tpu.matmul %40, %42, %cst_23 {dimension_numbers = #tpu.dot_dimension_numbers<[1], [0], [0], [1], [0, 0, 1, 1], [], []>} : vector<8x32xbf16>, vector<32x96xbf16>, vector<8x96xf32> -> vector<8x96xf32>
    %c0_24 = arith.constant 0 : index
    %c1_25 = arith.constant 1 : index
    %c0_26 = arith.constant 0 : index
    %c0_27 = arith.constant 0 : index
    %44 = vector.load %arg5[%c0_24, %c1_25, %c0_26, %c0_27] : memref<4x2x32x96xbf16, #tpu.memory_space<vmem>>, vector<1x1x32x96xbf16>
    %45 = vector.shape_cast %44 : vector<1x1x32x96xbf16> to vector<32x96xbf16>
    %cst_28 = arith.constant dense<0.000000e+00> : vector<8x96xf32>
    %46 = tpu.matmul %9, %45, %cst_28 {dimension_numbers = #tpu.dot_dimension_numbers<[1], [0], [0], [1], [0, 0, 1, 1], [], []>} : vector<8x32xbf16>, vector<32x96xbf16>, vector<8x96xf32> -> vector<8x96xf32>
    %c0_29 = arith.constant 0 : index
    %c1_30 = arith.constant 1 : index
    %c0_31 = arith.constant 0 : index
    %c0_32 = arith.constant 0 : index
    %47 = vector.load %arg6[%c0_29, %c1_30, %c0_31, %c0_32] : memref<4x2x8x128xf32, #tpu.memory_space<vmem>>, vector<1x1x8x128xf32>
    %48 = vector.shape_cast %47 : vector<1x1x8x128xf32> to vector<8x128xf32>
    %49 = vector.extract_strided_slice %48 {offsets = [0, 0], sizes = [8, 96], strides = [1, 1]} : vector<8x128xf32> to vector<8x96xf32>
    %50 = arith.addf %43, %49 : vector<8x96xf32>
    %51 = vector.extract_strided_slice %50 {offsets = [0, 0], sizes = [8, 64], strides = [1, 1]} : vector<8x96xf32> to vector<8x64xf32>
    %52 = vector.extract_strided_slice %46 {offsets = [0, 0], sizes = [8, 64], strides = [1, 1]} : vector<8x96xf32> to vector<8x64xf32>
    %53 = arith.addf %51, %52 : vector<8x64xf32>
    %54 = arith.negf %53 : vector<8x64xf32>
    %55 = math.exp %54 : vector<8x64xf32>
    %cst_33 = arith.constant 1.000000e+00 : f32
    %56 = vector.broadcast %cst_33 : f32 to vector<8x64xf32>
    %57 = arith.addf %56, %55 : vector<8x64xf32>
    %58 = arith.divf %56, %57 : vector<8x64xf32>
    %59 = vector.extract_strided_slice %58 {offsets = [0, 0], sizes = [8, 32], strides = [1, 1]} : vector<8x64xf32> to vector<8x32xf32>
    %60 = vector.extract_strided_slice %58 {offsets = [0, 32], sizes = [8, 32], strides = [1, 1]} : vector<8x64xf32> to vector<8x32xf32>
    %61 = vector.extract_strided_slice %50 {offsets = [0, 64], sizes = [8, 32], strides = [1, 1]} : vector<8x96xf32> to vector<8x32xf32>
    %62 = vector.extract_strided_slice %46 {offsets = [0, 64], sizes = [8, 32], strides = [1, 1]} : vector<8x96xf32> to vector<8x32xf32>
    %63 = vector.extract_strided_slice %48 {offsets = [0, 96], sizes = [8, 32], strides = [1, 1]} : vector<8x128xf32> to vector<8x32xf32>
    %64 = arith.addf %62, %63 : vector<8x32xf32>
    %65 = arith.mulf %60, %64 : vector<8x32xf32>
    %66 = arith.addf %61, %65 : vector<8x32xf32>
    %67 = math.tanh %66 : vector<8x32xf32>
    %cst_34 = arith.constant 1.000000e+00 : f32
    %68 = vector.broadcast %cst_34 : f32 to vector<8x32xf32>
    %69 = arith.subf %68, %59 : vector<8x32xf32>
    %70 = arith.mulf %69, %7 : vector<8x32xf32>
    %71 = arith.mulf %59, %67 : vector<8x32xf32>
    %72 = arith.addf %70, %71 : vector<8x32xf32>
    %73 = arith.truncf %72 : vector<8x32xf32> to vector<8x32xbf16>
    %74 = vector.extract_strided_slice %3 {offsets = [0, 128], sizes = [8, 96], strides = [1, 1]} : vector<8x512xf32> to vector<8x96xf32>
    %c1_35 = arith.constant 1 : index
    %c0_36 = arith.constant 0 : index
    %c0_37 = arith.constant 0 : index
    %c0_38 = arith.constant 0 : index
    %75 = vector.load %arg5[%c1_35, %c0_36, %c0_37, %c0_38] : memref<4x2x32x96xbf16, #tpu.memory_space<vmem>>, vector<1x1x32x96xbf16>
    %76 = vector.shape_cast %75 : vector<1x1x32x96xbf16> to vector<32x96xbf16>
    %cst_39 = arith.constant dense<0.000000e+00> : vector<8x96xf32>
    %77 = tpu.matmul %40, %76, %cst_39 {dimension_numbers = #tpu.dot_dimension_numbers<[1], [0], [0], [1], [0, 0, 1, 1], [], []>} : vector<8x32xbf16>, vector<32x96xbf16>, vector<8x96xf32> -> vector<8x96xf32>
    %c1_40 = arith.constant 1 : index
    %c0_41 = arith.constant 0 : index
    %c0_42 = arith.constant 0 : index
    %c0_43 = arith.constant 0 : index
    %78 = vector.load %arg6[%c1_40, %c0_41, %c0_42, %c0_43] : memref<4x2x8x128xf32, #tpu.memory_space<vmem>>, vector<1x1x8x128xf32>
    %79 = vector.shape_cast %78 : vector<1x1x8x128xf32> to vector<8x128xf32>
    %80 = vector.extract_strided_slice %79 {offsets = [0, 0], sizes = [8, 96], strides = [1, 1]} : vector<8x128xf32> to vector<8x96xf32>
    %81 = arith.addf %74, %80 : vector<8x96xf32>
    %82 = vector.extract_strided_slice %81 {offsets = [0, 0], sizes = [8, 64], strides = [1, 1]} : vector<8x96xf32> to vector<8x64xf32>
    %83 = vector.extract_strided_slice %77 {offsets = [0, 0], sizes = [8, 64], strides = [1, 1]} : vector<8x96xf32> to vector<8x64xf32>
    %84 = arith.addf %82, %83 : vector<8x64xf32>
    %85 = arith.negf %84 : vector<8x64xf32>
    %86 = math.exp %85 : vector<8x64xf32>
    %cst_44 = arith.constant 1.000000e+00 : f32
    %87 = vector.broadcast %cst_44 : f32 to vector<8x64xf32>
    %88 = arith.addf %87, %86 : vector<8x64xf32>
    %89 = arith.divf %87, %88 : vector<8x64xf32>
    %90 = vector.extract_strided_slice %89 {offsets = [0, 0], sizes = [8, 32], strides = [1, 1]} : vector<8x64xf32> to vector<8x32xf32>
    %91 = vector.extract_strided_slice %89 {offsets = [0, 32], sizes = [8, 32], strides = [1, 1]} : vector<8x64xf32> to vector<8x32xf32>
    %92 = vector.extract_strided_slice %81 {offsets = [0, 64], sizes = [8, 32], strides = [1, 1]} : vector<8x96xf32> to vector<8x32xf32>
    %93 = vector.extract_strided_slice %77 {offsets = [0, 64], sizes = [8, 32], strides = [1, 1]} : vector<8x96xf32> to vector<8x32xf32>
    %94 = vector.extract_strided_slice %79 {offsets = [0, 96], sizes = [8, 32], strides = [1, 1]} : vector<8x128xf32> to vector<8x32xf32>
    %95 = arith.addf %93, %94 : vector<8x32xf32>
    %96 = arith.mulf %91, %95 : vector<8x32xf32>
    %97 = arith.addf %92, %96 : vector<8x32xf32>
    %98 = math.tanh %97 : vector<8x32xf32>
    %cst_45 = arith.constant 1.000000e+00 : f32
    %99 = vector.broadcast %cst_45 : f32 to vector<8x32xf32>
    %100 = arith.subf %99, %90 : vector<8x32xf32>
    %101 = arith.mulf %100, %39 : vector<8x32xf32>
    %102 = arith.mulf %90, %98 : vector<8x32xf32>
    %103 = arith.addf %101, %102 : vector<8x32xf32>
    %104 = arith.truncf %103 : vector<8x32xf32> to vector<8x32xbf16>
    %c1_46 = arith.constant 1 : index
    %c0_47 = arith.constant 0 : index
    %c0_48 = arith.constant 0 : index
    %c0_49 = arith.constant 0 : index
    %105 = vector.load %arg4[%c1_46, %c0_47, %c0_48, %c0_49] : memref<4x1x32x96xbf16, #tpu.memory_space<vmem>>, vector<1x1x32x96xbf16>
    %106 = vector.shape_cast %105 : vector<1x1x32x96xbf16> to vector<32x96xbf16>
    %cst_50 = arith.constant dense<0.000000e+00> : vector<8x96xf32>
    %107 = tpu.matmul %104, %106, %cst_50 {dimension_numbers = #tpu.dot_dimension_numbers<[1], [0], [0], [1], [0, 0, 1, 1], [], []>} : vector<8x32xbf16>, vector<32x96xbf16>, vector<8x96xf32> -> vector<8x96xf32>
    %c1_51 = arith.constant 1 : index
    %c1_52 = arith.constant 1 : index
    %c0_53 = arith.constant 0 : index
    %c0_54 = arith.constant 0 : index
    %108 = vector.load %arg5[%c1_51, %c1_52, %c0_53, %c0_54] : memref<4x2x32x96xbf16, #tpu.memory_space<vmem>>, vector<1x1x32x96xbf16>
    %109 = vector.shape_cast %108 : vector<1x1x32x96xbf16> to vector<32x96xbf16>
    %cst_55 = arith.constant dense<0.000000e+00> : vector<8x96xf32>
    %110 = tpu.matmul %73, %109, %cst_55 {dimension_numbers = #tpu.dot_dimension_numbers<[1], [0], [0], [1], [0, 0, 1, 1], [], []>} : vector<8x32xbf16>, vector<32x96xbf16>, vector<8x96xf32> -> vector<8x96xf32>
    %c1_56 = arith.constant 1 : index
    %c1_57 = arith.constant 1 : index
    %c0_58 = arith.constant 0 : index
    %c0_59 = arith.constant 0 : index
    %111 = vector.load %arg6[%c1_56, %c1_57, %c0_58, %c0_59] : memref<4x2x8x128xf32, #tpu.memory_space<vmem>>, vector<1x1x8x128xf32>
    %112 = vector.shape_cast %111 : vector<1x1x8x128xf32> to vector<8x128xf32>
    %113 = vector.extract_strided_slice %112 {offsets = [0, 0], sizes = [8, 96], strides = [1, 1]} : vector<8x128xf32> to vector<8x96xf32>
    %114 = arith.addf %107, %113 : vector<8x96xf32>
    %115 = vector.extract_strided_slice %114 {offsets = [0, 0], sizes = [8, 64], strides = [1, 1]} : vector<8x96xf32> to vector<8x64xf32>
    %116 = vector.extract_strided_slice %110 {offsets = [0, 0], sizes = [8, 64], strides = [1, 1]} : vector<8x96xf32> to vector<8x64xf32>
    %117 = arith.addf %115, %116 : vector<8x64xf32>
    %118 = arith.negf %117 : vector<8x64xf32>
    %119 = math.exp %118 : vector<8x64xf32>
    %cst_60 = arith.constant 1.000000e+00 : f32
    %120 = vector.broadcast %cst_60 : f32 to vector<8x64xf32>
    %121 = arith.addf %120, %119 : vector<8x64xf32>
    %122 = arith.divf %120, %121 : vector<8x64xf32>
    %123 = vector.extract_strided_slice %122 {offsets = [0, 0], sizes = [8, 32], strides = [1, 1]} : vector<8x64xf32> to vector<8x32xf32>
    %124 = vector.extract_strided_slice %122 {offsets = [0, 32], sizes = [8, 32], strides = [1, 1]} : vector<8x64xf32> to vector<8x32xf32>
    %125 = vector.extract_strided_slice %114 {offsets = [0, 64], sizes = [8, 32], strides = [1, 1]} : vector<8x96xf32> to vector<8x32xf32>
    %126 = vector.extract_strided_slice %110 {offsets = [0, 64], sizes = [8, 32], strides = [1, 1]} : vector<8x96xf32> to vector<8x32xf32>
    %127 = vector.extract_strided_slice %112 {offsets = [0, 96], sizes = [8, 32], strides = [1, 1]} : vector<8x128xf32> to vector<8x32xf32>
    %128 = arith.addf %126, %127 : vector<8x32xf32>
    %129 = arith.mulf %124, %128 : vector<8x32xf32>
    %130 = arith.addf %125, %129 : vector<8x32xf32>
    %131 = math.tanh %130 : vector<8x32xf32>
    %cst_61 = arith.constant 1.000000e+00 : f32
    %132 = vector.broadcast %cst_61 : f32 to vector<8x32xf32>
    %133 = arith.subf %132, %123 : vector<8x32xf32>
    %134 = arith.mulf %133, %72 : vector<8x32xf32>
    %135 = arith.mulf %123, %131 : vector<8x32xf32>
    %136 = arith.addf %134, %135 : vector<8x32xf32>
    %137 = arith.truncf %136 : vector<8x32xf32> to vector<8x32xbf16>
    %138 = vector.extract_strided_slice %3 {offsets = [0, 256], sizes = [8, 96], strides = [1, 1]} : vector<8x512xf32> to vector<8x96xf32>
    %c2 = arith.constant 2 : index
    %c0_62 = arith.constant 0 : index
    %c0_63 = arith.constant 0 : index
    %c0_64 = arith.constant 0 : index
    %139 = vector.load %arg5[%c2, %c0_62, %c0_63, %c0_64] : memref<4x2x32x96xbf16, #tpu.memory_space<vmem>>, vector<1x1x32x96xbf16>
    %140 = vector.shape_cast %139 : vector<1x1x32x96xbf16> to vector<32x96xbf16>
    %cst_65 = arith.constant dense<0.000000e+00> : vector<8x96xf32>
    %141 = tpu.matmul %104, %140, %cst_65 {dimension_numbers = #tpu.dot_dimension_numbers<[1], [0], [0], [1], [0, 0, 1, 1], [], []>} : vector<8x32xbf16>, vector<32x96xbf16>, vector<8x96xf32> -> vector<8x96xf32>
    %c2_66 = arith.constant 2 : index
    %c0_67 = arith.constant 0 : index
    %c0_68 = arith.constant 0 : index
    %c0_69 = arith.constant 0 : index
    %142 = vector.load %arg6[%c2_66, %c0_67, %c0_68, %c0_69] : memref<4x2x8x128xf32, #tpu.memory_space<vmem>>, vector<1x1x8x128xf32>
    %143 = vector.shape_cast %142 : vector<1x1x8x128xf32> to vector<8x128xf32>
    %144 = vector.extract_strided_slice %143 {offsets = [0, 0], sizes = [8, 96], strides = [1, 1]} : vector<8x128xf32> to vector<8x96xf32>
    %145 = arith.addf %138, %144 : vector<8x96xf32>
    %146 = vector.extract_strided_slice %145 {offsets = [0, 0], sizes = [8, 64], strides = [1, 1]} : vector<8x96xf32> to vector<8x64xf32>
    %147 = vector.extract_strided_slice %141 {offsets = [0, 0], sizes = [8, 64], strides = [1, 1]} : vector<8x96xf32> to vector<8x64xf32>
    %148 = arith.addf %146, %147 : vector<8x64xf32>
    %149 = arith.negf %148 : vector<8x64xf32>
    %150 = math.exp %149 : vector<8x64xf32>
    %cst_70 = arith.constant 1.000000e+00 : f32
    %151 = vector.broadcast %cst_70 : f32 to vector<8x64xf32>
    %152 = arith.addf %151, %150 : vector<8x64xf32>
    %153 = arith.divf %151, %152 : vector<8x64xf32>
    %154 = vector.extract_strided_slice %153 {offsets = [0, 0], sizes = [8, 32], strides = [1, 1]} : vector<8x64xf32> to vector<8x32xf32>
    %155 = vector.extract_strided_slice %153 {offsets = [0, 32], sizes = [8, 32], strides = [1, 1]} : vector<8x64xf32> to vector<8x32xf32>
    %156 = vector.extract_strided_slice %145 {offsets = [0, 64], sizes = [8, 32], strides = [1, 1]} : vector<8x96xf32> to vector<8x32xf32>
    %157 = vector.extract_strided_slice %141 {offsets = [0, 64], sizes = [8, 32], strides = [1, 1]} : vector<8x96xf32> to vector<8x32xf32>
    %158 = vector.extract_strided_slice %143 {offsets = [0, 96], sizes = [8, 32], strides = [1, 1]} : vector<8x128xf32> to vector<8x32xf32>
    %159 = arith.addf %157, %158 : vector<8x32xf32>
    %160 = arith.mulf %155, %159 : vector<8x32xf32>
    %161 = arith.addf %156, %160 : vector<8x32xf32>
    %162 = math.tanh %161 : vector<8x32xf32>
    %cst_71 = arith.constant 1.000000e+00 : f32
    %163 = vector.broadcast %cst_71 : f32 to vector<8x32xf32>
    %164 = arith.subf %163, %154 : vector<8x32xf32>
    %165 = arith.mulf %164, %103 : vector<8x32xf32>
    %166 = arith.mulf %154, %162 : vector<8x32xf32>
    %167 = arith.addf %165, %166 : vector<8x32xf32>
    %168 = arith.truncf %167 : vector<8x32xf32> to vector<8x32xbf16>
    %c2_72 = arith.constant 2 : index
    %c0_73 = arith.constant 0 : index
    %c0_74 = arith.constant 0 : index
    %c0_75 = arith.constant 0 : index
    %169 = vector.load %arg4[%c2_72, %c0_73, %c0_74, %c0_75] : memref<4x1x32x96xbf16, #tpu.memory_space<vmem>>, vector<1x1x32x96xbf16>
    %170 = vector.shape_cast %169 : vector<1x1x32x96xbf16> to vector<32x96xbf16>
    %cst_76 = arith.constant dense<0.000000e+00> : vector<8x96xf32>
    %171 = tpu.matmul %168, %170, %cst_76 {dimension_numbers = #tpu.dot_dimension_numbers<[1], [0], [0], [1], [0, 0, 1, 1], [], []>} : vector<8x32xbf16>, vector<32x96xbf16>, vector<8x96xf32> -> vector<8x96xf32>
    %c2_77 = arith.constant 2 : index
    %c1_78 = arith.constant 1 : index
    %c0_79 = arith.constant 0 : index
    %c0_80 = arith.constant 0 : index
    %172 = vector.load %arg5[%c2_77, %c1_78, %c0_79, %c0_80] : memref<4x2x32x96xbf16, #tpu.memory_space<vmem>>, vector<1x1x32x96xbf16>
    %173 = vector.shape_cast %172 : vector<1x1x32x96xbf16> to vector<32x96xbf16>
    %cst_81 = arith.constant dense<0.000000e+00> : vector<8x96xf32>
    %174 = tpu.matmul %137, %173, %cst_81 {dimension_numbers = #tpu.dot_dimension_numbers<[1], [0], [0], [1], [0, 0, 1, 1], [], []>} : vector<8x32xbf16>, vector<32x96xbf16>, vector<8x96xf32> -> vector<8x96xf32>
    %c2_82 = arith.constant 2 : index
    %c1_83 = arith.constant 1 : index
    %c0_84 = arith.constant 0 : index
    %c0_85 = arith.constant 0 : index
    %175 = vector.load %arg6[%c2_82, %c1_83, %c0_84, %c0_85] : memref<4x2x8x128xf32, #tpu.memory_space<vmem>>, vector<1x1x8x128xf32>
    %176 = vector.shape_cast %175 : vector<1x1x8x128xf32> to vector<8x128xf32>
    %177 = vector.extract_strided_slice %176 {offsets = [0, 0], sizes = [8, 96], strides = [1, 1]} : vector<8x128xf32> to vector<8x96xf32>
    %178 = arith.addf %171, %177 : vector<8x96xf32>
    %179 = vector.extract_strided_slice %178 {offsets = [0, 0], sizes = [8, 64], strides = [1, 1]} : vector<8x96xf32> to vector<8x64xf32>
    %180 = vector.extract_strided_slice %174 {offsets = [0, 0], sizes = [8, 64], strides = [1, 1]} : vector<8x96xf32> to vector<8x64xf32>
    %181 = arith.addf %179, %180 : vector<8x64xf32>
    %182 = arith.negf %181 : vector<8x64xf32>
    %183 = math.exp %182 : vector<8x64xf32>
    %cst_86 = arith.constant 1.000000e+00 : f32
    %184 = vector.broadcast %cst_86 : f32 to vector<8x64xf32>
    %185 = arith.addf %184, %183 : vector<8x64xf32>
    %186 = arith.divf %184, %185 : vector<8x64xf32>
    %187 = vector.extract_strided_slice %186 {offsets = [0, 0], sizes = [8, 32], strides = [1, 1]} : vector<8x64xf32> to vector<8x32xf32>
    %188 = vector.extract_strided_slice %186 {offsets = [0, 32], sizes = [8, 32], strides = [1, 1]} : vector<8x64xf32> to vector<8x32xf32>
    %189 = vector.extract_strided_slice %178 {offsets = [0, 64], sizes = [8, 32], strides = [1, 1]} : vector<8x96xf32> to vector<8x32xf32>
    %190 = vector.extract_strided_slice %174 {offsets = [0, 64], sizes = [8, 32], strides = [1, 1]} : vector<8x96xf32> to vector<8x32xf32>
    %191 = vector.extract_strided_slice %176 {offsets = [0, 96], sizes = [8, 32], strides = [1, 1]} : vector<8x128xf32> to vector<8x32xf32>
    %192 = arith.addf %190, %191 : vector<8x32xf32>
    %193 = arith.mulf %188, %192 : vector<8x32xf32>
    %194 = arith.addf %189, %193 : vector<8x32xf32>
    %195 = math.tanh %194 : vector<8x32xf32>
    %cst_87 = arith.constant 1.000000e+00 : f32
    %196 = vector.broadcast %cst_87 : f32 to vector<8x32xf32>
    %197 = arith.subf %196, %187 : vector<8x32xf32>
    %198 = arith.mulf %197, %136 : vector<8x32xf32>
    %199 = arith.mulf %187, %195 : vector<8x32xf32>
    %200 = arith.addf %198, %199 : vector<8x32xf32>
    %201 = arith.truncf %200 : vector<8x32xf32> to vector<8x32xbf16>
    %202 = vector.extract_strided_slice %3 {offsets = [0, 384], sizes = [8, 96], strides = [1, 1]} : vector<8x512xf32> to vector<8x96xf32>
    %c3 = arith.constant 3 : index
    %c0_88 = arith.constant 0 : index
    %c0_89 = arith.constant 0 : index
    %c0_90 = arith.constant 0 : index
    %203 = vector.load %arg5[%c3, %c0_88, %c0_89, %c0_90] : memref<4x2x32x96xbf16, #tpu.memory_space<vmem>>, vector<1x1x32x96xbf16>
    %204 = vector.shape_cast %203 : vector<1x1x32x96xbf16> to vector<32x96xbf16>
    %cst_91 = arith.constant dense<0.000000e+00> : vector<8x96xf32>
    %205 = tpu.matmul %168, %204, %cst_91 {dimension_numbers = #tpu.dot_dimension_numbers<[1], [0], [0], [1], [0, 0, 1, 1], [], []>} : vector<8x32xbf16>, vector<32x96xbf16>, vector<8x96xf32> -> vector<8x96xf32>
    %c3_92 = arith.constant 3 : index
    %c0_93 = arith.constant 0 : index
    %c0_94 = arith.constant 0 : index
    %c0_95 = arith.constant 0 : index
    %206 = vector.load %arg6[%c3_92, %c0_93, %c0_94, %c0_95] : memref<4x2x8x128xf32, #tpu.memory_space<vmem>>, vector<1x1x8x128xf32>
    %207 = vector.shape_cast %206 : vector<1x1x8x128xf32> to vector<8x128xf32>
    %208 = vector.extract_strided_slice %207 {offsets = [0, 0], sizes = [8, 96], strides = [1, 1]} : vector<8x128xf32> to vector<8x96xf32>
    %209 = arith.addf %202, %208 : vector<8x96xf32>
    %210 = vector.extract_strided_slice %209 {offsets = [0, 0], sizes = [8, 64], strides = [1, 1]} : vector<8x96xf32> to vector<8x64xf32>
    %211 = vector.extract_strided_slice %205 {offsets = [0, 0], sizes = [8, 64], strides = [1, 1]} : vector<8x96xf32> to vector<8x64xf32>
    %212 = arith.addf %210, %211 : vector<8x64xf32>
    %213 = arith.negf %212 : vector<8x64xf32>
    %214 = math.exp %213 : vector<8x64xf32>
    %cst_96 = arith.constant 1.000000e+00 : f32
    %215 = vector.broadcast %cst_96 : f32 to vector<8x64xf32>
    %216 = arith.addf %215, %214 : vector<8x64xf32>
    %217 = arith.divf %215, %216 : vector<8x64xf32>
    %218 = vector.extract_strided_slice %217 {offsets = [0, 0], sizes = [8, 32], strides = [1, 1]} : vector<8x64xf32> to vector<8x32xf32>
    %219 = vector.extract_strided_slice %217 {offsets = [0, 32], sizes = [8, 32], strides = [1, 1]} : vector<8x64xf32> to vector<8x32xf32>
    %220 = vector.extract_strided_slice %209 {offsets = [0, 64], sizes = [8, 32], strides = [1, 1]} : vector<8x96xf32> to vector<8x32xf32>
    %221 = vector.extract_strided_slice %205 {offsets = [0, 64], sizes = [8, 32], strides = [1, 1]} : vector<8x96xf32> to vector<8x32xf32>
    %222 = vector.extract_strided_slice %207 {offsets = [0, 96], sizes = [8, 32], strides = [1, 1]} : vector<8x128xf32> to vector<8x32xf32>
    %223 = arith.addf %221, %222 : vector<8x32xf32>
    %224 = arith.mulf %219, %223 : vector<8x32xf32>
    %225 = arith.addf %220, %224 : vector<8x32xf32>
    %226 = math.tanh %225 : vector<8x32xf32>
    %cst_97 = arith.constant 1.000000e+00 : f32
    %227 = vector.broadcast %cst_97 : f32 to vector<8x32xf32>
    %228 = arith.subf %227, %218 : vector<8x32xf32>
    %229 = arith.mulf %228, %167 : vector<8x32xf32>
    %230 = arith.mulf %218, %226 : vector<8x32xf32>
    %231 = arith.addf %229, %230 : vector<8x32xf32>
    %232 = arith.truncf %231 : vector<8x32xf32> to vector<8x32xbf16>
    %c3_98 = arith.constant 3 : index
    %c0_99 = arith.constant 0 : index
    %c0_100 = arith.constant 0 : index
    %c0_101 = arith.constant 0 : index
    %233 = vector.load %arg4[%c3_98, %c0_99, %c0_100, %c0_101] : memref<4x1x32x96xbf16, #tpu.memory_space<vmem>>, vector<1x1x32x96xbf16>
    %234 = vector.shape_cast %233 : vector<1x1x32x96xbf16> to vector<32x96xbf16>
    %cst_102 = arith.constant dense<0.000000e+00> : vector<8x96xf32>
    %235 = tpu.matmul %232, %234, %cst_102 {dimension_numbers = #tpu.dot_dimension_numbers<[1], [0], [0], [1], [0, 0, 1, 1], [], []>} : vector<8x32xbf16>, vector<32x96xbf16>, vector<8x96xf32> -> vector<8x96xf32>
    %c3_103 = arith.constant 3 : index
    %c1_104 = arith.constant 1 : index
    %c0_105 = arith.constant 0 : index
    %c0_106 = arith.constant 0 : index
    %236 = vector.load %arg5[%c3_103, %c1_104, %c0_105, %c0_106] : memref<4x2x32x96xbf16, #tpu.memory_space<vmem>>, vector<1x1x32x96xbf16>
    %237 = vector.shape_cast %236 : vector<1x1x32x96xbf16> to vector<32x96xbf16>
    %cst_107 = arith.constant dense<0.000000e+00> : vector<8x96xf32>
    %238 = tpu.matmul %201, %237, %cst_107 {dimension_numbers = #tpu.dot_dimension_numbers<[1], [0], [0], [1], [0, 0, 1, 1], [], []>} : vector<8x32xbf16>, vector<32x96xbf16>, vector<8x96xf32> -> vector<8x96xf32>
    %c3_108 = arith.constant 3 : index
    %c1_109 = arith.constant 1 : index
    %c0_110 = arith.constant 0 : index
    %c0_111 = arith.constant 0 : index
    %239 = vector.load %arg6[%c3_108, %c1_109, %c0_110, %c0_111] : memref<4x2x8x128xf32, #tpu.memory_space<vmem>>, vector<1x1x8x128xf32>
    %240 = vector.shape_cast %239 : vector<1x1x8x128xf32> to vector<8x128xf32>
    %241 = vector.extract_strided_slice %240 {offsets = [0, 0], sizes = [8, 96], strides = [1, 1]} : vector<8x128xf32> to vector<8x96xf32>
    %242 = arith.addf %235, %241 : vector<8x96xf32>
    %243 = vector.extract_strided_slice %242 {offsets = [0, 0], sizes = [8, 64], strides = [1, 1]} : vector<8x96xf32> to vector<8x64xf32>
    %244 = vector.extract_strided_slice %238 {offsets = [0, 0], sizes = [8, 64], strides = [1, 1]} : vector<8x96xf32> to vector<8x64xf32>
    %245 = arith.addf %243, %244 : vector<8x64xf32>
    %246 = arith.negf %245 : vector<8x64xf32>
    %247 = math.exp %246 : vector<8x64xf32>
    %cst_112 = arith.constant 1.000000e+00 : f32
    %248 = vector.broadcast %cst_112 : f32 to vector<8x64xf32>
    %249 = arith.addf %248, %247 : vector<8x64xf32>
    %250 = arith.divf %248, %249 : vector<8x64xf32>
    %251 = vector.extract_strided_slice %250 {offsets = [0, 0], sizes = [8, 32], strides = [1, 1]} : vector<8x64xf32> to vector<8x32xf32>
    %252 = vector.extract_strided_slice %250 {offsets = [0, 32], sizes = [8, 32], strides = [1, 1]} : vector<8x64xf32> to vector<8x32xf32>
    %253 = vector.extract_strided_slice %242 {offsets = [0, 64], sizes = [8, 32], strides = [1, 1]} : vector<8x96xf32> to vector<8x32xf32>
    %254 = vector.extract_strided_slice %238 {offsets = [0, 64], sizes = [8, 32], strides = [1, 1]} : vector<8x96xf32> to vector<8x32xf32>
    %255 = vector.extract_strided_slice %240 {offsets = [0, 96], sizes = [8, 32], strides = [1, 1]} : vector<8x128xf32> to vector<8x32xf32>
    %256 = arith.addf %254, %255 : vector<8x32xf32>
    %257 = arith.mulf %252, %256 : vector<8x32xf32>
    %258 = arith.addf %253, %257 : vector<8x32xf32>
    %259 = math.tanh %258 : vector<8x32xf32>
    %cst_113 = arith.constant 1.000000e+00 : f32
    %260 = vector.broadcast %cst_113 : f32 to vector<8x32xf32>
    %261 = arith.subf %260, %251 : vector<8x32xf32>
    %262 = arith.mulf %261, %200 : vector<8x32xf32>
    %263 = arith.mulf %251, %259 : vector<8x32xf32>
    %264 = arith.addf %262, %263 : vector<8x32xf32>
    %265 = arith.truncf %264 : vector<8x32xf32> to vector<8x32xbf16>
    %266 = tpu.concatenate %73, %137, %201, %265 in 1 : vector<8x32xbf16>, vector<8x32xbf16>, vector<8x32xbf16>, vector<8x32xbf16> -> vector<8x128xbf16>
    %c0_114 = arith.constant 0 : index
    %c0_115 = arith.constant 0 : index
    %267 = vector.load %arg7[%c0_114, %c0_115] : memref<128x32xbf16, #tpu.memory_space<vmem>>, vector<128x32xbf16>
    %cst_116 = arith.constant dense<0.000000e+00> : vector<8x32xf32>
    %268 = tpu.matmul %266, %267, %cst_116 {dimension_numbers = #tpu.dot_dimension_numbers<[1], [0], [0], [1], [0, 0, 1, 1], [], []>} : vector<8x128xbf16>, vector<128x32xbf16>, vector<8x32xf32> -> vector<8x32xf32>
    %c0_117 = arith.constant 0 : index
    %c0_118 = arith.constant 0 : index
    %269 = vector.load %arg8[%c0_117, %c0_118] : memref<1x32xf32, #tpu.memory_space<vmem>>, vector<1x32xf32>
    %270 = vector.broadcast %269 : vector<1x32xf32> to vector<8x32xf32>
    %271 = arith.addf %268, %270 : vector<8x32xf32>
    %c0_119 = arith.constant 0 : index
    %c0_120 = arith.constant 0 : index
    %272 = vector.load %arg9[%c0_119, %c0_120] : memref<8x32xf32, #tpu.memory_space<vmem>>, vector<8x32xf32>
    tpu.vector_store %arg9[%c0_119, %c0_120], %271 {strides = array<i32>} : memref<8x32xf32, #tpu.memory_space<vmem>>, vector<8x32xf32>,
    return
  }
  func.func @transform_0(%arg0: i32) -> (i32, i32) {
    %c0_i32 = arith.constant 0 : i32
    %c0_i32_0 = arith.constant 0 : i32
    %c0_i32_1 = arith.constant 0 : i32
    return %c0_i32, %c0_i32_0 : i32, i32
  }
  func.func @transform_1(%arg0: i32) -> (i32, i32, i32) {
    %c0_i32 = arith.constant 0 : i32
    %c0_i32_0 = arith.constant 0 : i32
    %c0_i32_1 = arith.constant 0 : i32
    %c0_i32_2 = arith.constant 0 : i32
    return %c0_i32, %c0_i32_0, %c0_i32_1 : i32, i32, i32
  }
  func.func @transform_2(%arg0: i32) -> (i32, i32) {
    %c0_i32 = arith.constant 0 : i32
    %c0_i32_0 = arith.constant 0 : i32
    %c0_i32_1 = arith.constant 0 : i32
    return %c0_i32, %c0_i32_0 : i32, i32
  }
  func.func @transform_3(%arg0: i32) -> (i32, i32, i32, i32) {
    %c0_i32 = arith.constant 0 : i32
    %c0_i32_0 = arith.constant 0 : i32
    %c0_i32_1 = arith.constant 0 : i32
    %c0_i32_2 = arith.constant 0 : i32
    %c0_i32_3 = arith.constant 0 : i32
    return %c0_i32, %c0_i32_0, %c0_i32_1, %c0_i32_2 : i32, i32, i32, i32
  }
  func.func @transform_4(%arg0: i32) -> (i32, i32, i32, i32) {
    %c0_i32 = arith.constant 0 : i32
    %c0_i32_0 = arith.constant 0 : i32
    %c0_i32_1 = arith.constant 0 : i32
    %c0_i32_2 = arith.constant 0 : i32
    %c0_i32_3 = arith.constant 0 : i32
    return %c0_i32, %c0_i32_0, %c0_i32_1, %c0_i32_2 : i32, i32, i32, i32
  }
  func.func @transform_5(%arg0: i32) -> (i32, i32, i32, i32) {
    %c0_i32 = arith.constant 0 : i32
    %c0_i32_0 = arith.constant 0 : i32
    %c0_i32_1 = arith.constant 0 : i32
    %c0_i32_2 = arith.constant 0 : i32
    %c0_i32_3 = arith.constant 0 : i32
    return %c0_i32, %c0_i32_0, %c0_i32_1, %c0_i32_2 : i32, i32, i32, i32
  }
  func.func @transform_6(%arg0: i32) -> (i32, i32) {
    %c0_i32 = arith.constant 0 : i32
    %c0_i32_0 = arith.constant 0 : i32
    %c0_i32_1 = arith.constant 0 : i32
    return %c0_i32, %c0_i32_0 : i32, i32
  }
  func.func @transform_7(%arg0: i32) -> (i32, i32) {
    %c0_i32 = arith.constant 0 : i32
    %c0_i32_0 = arith.constant 0 : i32
    %c0_i32_1 = arith.constant 0 : i32
    return %c0_i32, %c0_i32_0 : i32, i32
  }
  func.func @transform_8(%arg0: i32) -> (i32, i32) {
    %c0_i32 = arith.constant 0 : i32
    %c0_i32_0 = arith.constant 0 : i32
    %c0_i32_1 = arith.constant 0 : i32
    return %c0_i32, %c0_i32_0 : i32, i32
  }
}

</mosaic_0001>

<bundles_post_ra>
// kernel: gru_net_forward.1
= control target key start
LH: loop header
LB: loop body
LE: loop exit
PB: predicated region body
PF: predicated region fallthrough
CT: control target
= control target key end

     0   :  { %v1662_v2 = vmov 0   ;;  %vm57_vm0 = vcmask 130048   ;;  %v1663_v8 = vmov 0.0   ;;  %vm164_vm1 = vcmask 261120   ;;  %s2036_s0 = inlined_call_operand.vmem [shape: f32[8,16], index: 0, kind: input, shape index: {}]   ;;  %s2037_s1 = inlined_call_operand.vmem [shape: f32[2,8,32], index: 1, kind: input, shape index: {}]   ;;  %s2038_s2 = inlined_call_operand.vmem [shape: bf16[16,512], index: 2, kind: input, shape index: {}]   ;;  %s2039_s3 = inlined_call_operand.vmem [shape: bf16[4,1,32,96], index: 3, kind: input, shape index: {}]   ;;  %s2040_s4 = inlined_call_operand.vmem [shape: bf16[4,2,32,96], index: 4, kind: input, shape index: {}]   ;;  %s2041_s5 = inlined_call_operand.vmem [shape: f32[4,2,8,128], index: 5, kind: input, shape index: {}]   ;;  %s2042_s6 = inlined_call_operand.vmem [shape: bf16[128,32], index: 6, kind: input, shape index: {}]   ;;  %s2043_s7 = inlined_call_operand.vmem [shape: f32[1,32], index: 7, kind: input, shape index: {}]   ;;  %s2044_s8 = inlined_call_operand.hbm [shape: f32[8,32], index: 8, kind: output, shape index: {}]  }
   0x1   :  { %v1552_v0 = vld [vmem:[%s2038_s2 + $0xc] ss:$16 sps:$4 sm:$0xff]   ;;  %v1554_v1 = vld [vmem:[%s2038_s2 + $0x8] ss:$16 sps:$4 sm:$0xff]   ;;  %134 = vmatprep.mubr.bf16.mxu1 %v1662_v2  ;;  %v31_v3 = vld [vmem:[%s2036_s0] sm:$0xff]  ;;  %93 = vmatprep.mubr.bf16.mxu0 %v1662_v2  ;;  %vm1664_vm2 = vmmov 0  }
   0x2   :  { %102 = vmatprep.subr.bf16.mxu1 %v1552_v0  ;;  %v32_v4 = vpack.c.bf16 %v31_v3, %v31_v3  ;;  %v1555_v5 = vld [vmem:[%s2040_s4] sm:$0xff]   ;;  %v1559_v9 = vld [vmem:[%s2040_s4 + $0x8] sm:$0xff]  }
   0x3   :  { %103 = vmatpush1.bf16.msra.mxu1 %v1554_v1  ;;  %v1556_v6 = vld [vmem:[%s2038_s2 + $0x4] ss:$16 sps:$4 sm:$0xff]   ;;  %v1558_v7 = vld [vmem:[%s2038_s2] ss:$16 sps:$4 sm:$0xff]   ;;  %s1665_s2 = smov 96  }
   0x4   :  { %1429 = vmatprep.subr.bf16.mxu1 %v1663_v8  ;;  %61 = vmatprep.subr.bf16.mxu0 %v1556_v6  ;;  %v1739_v10 = vld [vmem:[%s2037_s1] sm:$0xff] }
   0x5   :  { %v208_v11 = vld [vmem:[%s2041_s5] sm:$0xff]  ;;  %62 = vmatpush1.bf16.msra.mxu0 %v1558_v7  ;;  %v146_v12 = vpack.c.bf16 %v1739_v10, %v1739_v10 }
   0x6   :  { %1282 = vmatmul.mubr.msk.bf16.vlgmr.msra.gmra.mrb[0].mxu1 %vm57_vm0, %v32_v4  ;;  %218 = vrot.lane.b32.xlu0 %v208_v11, %s1665_s2 }
   0x7   :  { %1430 = vmatpush3.bf16.msra.mxu1 %v1555_v5  ;;  %1433 = vmatprep.mubr.msk.bf16.mxu1 %vm1664_vm2, %v1663_v8 }
   0x8   :  { %1431 = vmatprep.subr.bf16.mxu1 %v1663_v8  ;;  %1281 = vmatmul.mubr.msk.bf16.vlgmr.msra.gmra.mrb[0].mxu0 %vm57_vm0, %v32_v4 }
   0x9   :  { %1461 = vmatprep.subr.bf16.mxu0 %v1663_v8  ;;  %1465 = vmatprep.mubr.msk.bf16.mxu0 %vm1664_vm2, %v1663_v8 }
   0xb   :  { %1432 = vmatpush3.bf16.msra.mxu1 %v1559_v9 }
   0xc   :  { %1437 = vmatprep.subr.bf16.mxu1 %v1663_v8 }
   0xe   :  { %1434 = vmatmul.mubr.msk.bf16.vlgmr.msra.gmra.mrb[4].mxu1 %vm164_vm1, %v146_v12 }
   0xf   :  { %1441 = vmatprep.mubr.msk.bf16.mxu1 %vm1664_vm2, %v1663_v8 }
  0x10   :  { %13 = vsyncpa [#allocation3], 0  ;;  %s1666_s22 = smov 32   ;;  %v1560_v35 = vld [vmem:[%s2040_s4 + $0x10] sm:$0xff]   ;;  %v1561_v36 = vld [vmem:[%s2040_s4 + $0x18] sm:$0xff]   ;;  %s1667_s10 = smov 64  }
  0x11   :  { %1438 = vmatpush3.bf16.msra.mxu1 %v1560_v35  ;;  %v1776_v37 = vld [vmem:[%s2037_s1 + $0x8] sm:$0xff]  ;;  %v1562_v39 = vld [vmem:[%s2039_s3] sm:$0xff]   ;;  %v1307_v45 = vld [vmem:[%s2041_s5 + $0x10] sm:$0xff]  ;;  %vm1144_vm3 = vcmask 523264   ;;  %vm1147_vm4 = vcmask 785408   ;;  %s1668_s29 = smov [#allocation2]  }
  0x12   :  { %1439 = vmatprep.subr.bf16.mxu1 %v1663_v8  ;;  %v147_v38 = vpack.c.bf16 %v1776_v37, %v1776_v37  ;;  %v1563_v42 = vld [vmem:[%s2039_s3 + $0x8] sm:$0xff]   ;;  %v1564_v57 = vld [vmem:[%s2040_s4 + $0x20] sm:$0xff]   ;;  %s1269_s30 = sshll.u32 %s1668_s29, 4  ;;  %s1270_s30 = int_to_ptr.vmem [resolvable:$true] %s1269_s30 }
  0x13   :  { %v1295_v44 = vld [vmem:[%s2041_s5 + $0x8] sm:$0xff]  ;;  %p1643_p1 = scmp.lt.s32.totalorder %s1270_s30, %s1270_s30 }
  0x14   :  { %v1565_v59 = vld [vmem:[%s2040_s4 + $0x28] sm:$0xff]  }
  0x15   :  { %1440 = vmatpush3.bf16.msra.mxu1 %v1561_v36  ;;  %v1332_v36 = vld [vmem:[%s2041_s5 + $0x20] sm:$0xff] }
  0x16   :  { %1445 = vmatprep.subr.bf16.mxu1 %v1663_v8 }
  0x18   :  { %1442 = vmatmul.mubr.msk.bf16.vlgmr.msra.gmra.mrb[8].mxu1 %vm164_vm1, %v147_v38 }
  0x19   :  { %1446 = vmatpush3.bf16.msra.mxu1 %v1562_v39  ;;  %1449 = vmatprep.mubr.msk.bf16.mxu1 %vm1664_vm2, %v1663_v8 }
  0x1a   :  { %1447 = vmatprep.subr.bf16.mxu1 %v1663_v8 }
  0x1d   :  { %1448 = vmatpush3.bf16.msra.mxu1 %v1563_v42 }
  0x1e   :  { %1453 = vmatprep.subr.bf16.mxu1 %v1663_v8 }
  0x78   :  { %v219_v20 = vpop.permute.xlu0 %218 }
  0xd9   :  { %v1759_v13 = vpop.f32.mrb[0].mxu1 }
  0xda   :  { %v1761_v14 = vpop.f32.mrb[1].mxu1 }
  0xdb   :  { %v140_v15 = vpop.f32.mrb[2].mxu1  ;;  %v95_v17 = vpop.f32.mrb[0].mxu0 }
  0xdc   :  { %v141_v16 = vpop.f32.mrb[3].mxu1  ;;  %v1763_v18 = vpop.f32.mrb[1].mxu0  ;;  %v209_v27 = vadd.f32 %v208_v11, %v95_v17 }
  0xdd   :  { %v99_v19 = vpop.f32.mrb[2].mxu0  ;;  %v454_v17 = vadd.f32 %v1307_v45, %v1763_v18 }
  0xde   :  { %v100_v21 = vpop.f32.mrb[3].mxu0 }
  0xe1   :  { %v202_v22 = vpop.f32.mrb[4].mxu1 }
  0xe2   :  { %v221_v23 = vadd.f32 %v219_v20, %v202_v22  ;;  %v1435_v24 = vpop.f32.mrb[5].mxu1  ;;  %v210_v28 = vadd.f32 %v209_v27, %v202_v22 }
  0xe3   :  { %v205_v25 = vpop.f32.mrb[6].mxu1 }
  0xe4   :  { %223 = vrot.lane.b32.xlu0 %v221_v23, %s1665_s2  ;;  %v1436_v26 = vpop.f32.mrb[7].mxu1  ;;  %v1287_v29 = vmul.f32 -1.442695, %v210_v28  ;;  %v1567_v28 = vld [vmem:[%s2040_s4 + $0x38] sm:$0xff]  }
  0xe5   :  { %v1566_v26 = vld [vmem:[%s2040_s4 + $0x30] sm:$0xff]  }
  0xe6   :  { %1590 = vpow2.f32 %v1287_v29  ;;  %1462 = vmatpush3.bf16.msra.mxu0 %v1566_v26  ;;  %v1568_v29 = vld [vmem:[%s2039_s3 + $0x10] sm:$0xff]   ;;  %v1574_v26 = vld [vmem:[%s2039_s3 + $0x20] sm:$0xff]  }
  0xe7   :  { %1463 = vmatprep.subr.bf16.mxu0 %v1663_v8 }
  0xe8   :  { %371 = vrot.lane.b32.xlu0 %v1295_v44, %s1665_s2 }
  0xea   :  { %1464 = vmatpush3.bf16.msra.mxu0 %v1567_v28 }
  0xeb   :  { %v300_v46 = vpop.f32.mrb[8].mxu1  ;;  %1477 = vmatprep.subr.bf16.mxu0 %v1663_v8 }
  0xec   :  { %v1443_v47 = vpop.f32.mrb[9].mxu1 }
  0xed   :  { %v303_v48 = vpop.f32.mrb[10].mxu1 }
  0xee   :  { %v1444_v49 = vpop.f32.mrb[11].mxu1 }
  0xf0   :  { %v1591_v30 = vpop.eup %1590 }
  0xf1   :  { %v214_v31 = vadd.f32 1.0, %v1591_v30 }
  0xf3   :  { %1592 = vrcp.f32 %v214_v31 }
  0xfd   :  { %v1593_v32 = vpop.eup %1592 }
  0xfe   :  { %v233_v50 = vsub.f32 1.0, %v1593_v32 }
 0x100   :  { %v234_v52 = vmul.f32 %v233_v50, %v1739_v10 }
 0x156   :  { %v224_v33 = vpop.permute.xlu0 %223 }
 0x157   :  { %v226_v34 = vmul.f32 %v1593_v32, %v224_v33  ;;  %v1570_v33 = vld [vmem:[%s2039_s3 + $0x18] sm:$0xff]  }
 0x159   :  { %228 = vrot.lane.b32.xlu1 %v226_v34, %s1666_s22  ;;  %v1320_v34 = vld [vmem:[%s2041_s5 + $0x18] sm:$0xff] }
 0x15a   :  { %v372_v54 = vpop.permute.xlu0 %371 }
 0x15b   :  { %v374_v56 = vadd.f32 %v372_v54, %v300_v46 }
 0x15d   :  { %376 = vrot.lane.b32.xlu0 %v374_v56, %s1665_s2 }
 0x1cb   :  { %v229_v40 = vpop.permute.xlu1 %228 }
 0x1cc   :  { %v231_v41 = vadd.f32 %v229_v40, %v209_v27 }
 0x1ce   :  { %1594 = vtanh.f32 %v231_v41 }
 0x1cf   :  { %v377_v12 = vpop.permute.xlu0 %376 }
 0x1d8   :  { %v1595_v43 = vpop.eup %1594 }
 0x1d9   :  { %236 = vrot.lane.b32.xlu1 %v1595_v43, %s1667_s10  ;;  %v1569_v43 = vld [vmem:[%s2040_s4 + $0x40] sm:$0xff]  }
 0x1dd   :  { %463 = vrot.lane.b32.xlu1 %v1307_v45, %s1665_s2  ;;  %v1571_v45 = vld [vmem:[%s2040_s4 + $0x48] sm:$0xff]  }
 0x24b   :  { %v237_v51 = vpop.permute.xlu1 %236 }
 0x24c   :  { %v239_v53 = vmul.f32 %v1593_v32, %v237_v51 }
 0x24e   :  { %v1803_v55 = vadd.f32 %v239_v53, %v234_v52 }
 0x24f   :  { %v464_v3 = vpop.permute.xlu1 %463 }
 0x250   :  { %v241_v58 = vpack.c.bf16 %v1803_v55, %v1803_v55 }
 0x252   :  { %1450 = vmatmul.mubr.msk.bf16.vlgmr.msra.gmra.mrb[12].mxu1 %vm164_vm1, %v241_v58 }
 0x253   :  { %1454 = vmatpush3.bf16.msra.mxu1 %v1564_v57  ;;  %1457 = vmatprep.mubr.msk.bf16.mxu1 %vm1664_vm2, %v1663_v8 }
 0x254   :  { %1455 = vmatprep.subr.bf16.mxu1 %v1663_v8 }
 0x257   :  { %1456 = vmatpush3.bf16.msra.mxu1 %v1565_v59 }
 0x258   :  { %1469 = vmatprep.subr.bf16.mxu1 %v1663_v8 }
 0x25a   :  { %1458 = vmatmul.mubr.msk.bf16.vlgmr.msra.gmra.mrb[16].mxu1 %vm164_vm1, %v241_v58 }
 0x25b   :  { %1473 = vmatprep.mubr.msk.bf16.mxu1 %vm1664_vm2, %v1663_v8  ;;  %1470 = vmatpush3.bf16.msra.mxu1 %v1568_v29  ;;  %v1576_v29 = vld [vmem:[%s2039_s3 + $0x28] sm:$0xff]  }
 0x25c   :  { %1471 = vmatprep.subr.bf16.mxu1 %v1663_v8 }
 0x25f   :  { %1472 = vmatpush3.bf16.msra.mxu1 %v1570_v33 }
 0x260   :  { %1485 = vmatprep.subr.bf16.mxu1 %v1663_v8 }
 0x325   :  { %v357_v60 = vpop.f32.mrb[12].mxu1 }
 0x326   :  { %v358_v61 = vadd.f32 %v1295_v44, %v357_v60  ;;  %v1451_v62 = vpop.f32.mrb[13].mxu1 }
 0x327   :  { %v360_v63 = vpop.f32.mrb[14].mxu1 }
 0x328   :  { %v363_v0 = vadd.f32 %v358_v61, %v300_v46  ;;  %v1452_v1 = vpop.f32.mrb[15].mxu1 }
 0x32a   :  { %v1299_v2 = vmul.f32 -1.442695, %v363_v0 }
 0x32c   :  { %1596 = vpow2.f32 %v1299_v2 }
 0x32d   :  { %v446_v4 = vpop.f32.mrb[16].mxu1 }
 0x32e   :  { %v466_v5 = vadd.f32 %v464_v3, %v446_v4  ;;  %v1459_v6 = vpop.f32.mrb[17].mxu1  ;;  %v455_v19 = vadd.f32 %v454_v17, %v446_v4 }
 0x32f   :  { %v449_v7 = vpop.f32.mrb[18].mxu1 }
 0x330   :  { %v1460_v9 = vpop.f32.mrb[19].mxu1  ;;  %468 = vrot.lane.b32.xlu1 %v466_v5, %s1665_s2  ;;  %v1308_v20 = vmul.f32 -1.442695, %v455_v19 }
 0x336   :  { %v1597_v10 = vpop.eup %1596 }
 0x337   :  { %v367_v11 = vadd.f32 1.0, %v1597_v10 }
 0x339   :  { %1598 = vrcp.f32 %v367_v11 }
 0x33a   :  { %1600 = vpow2.f32 %v1308_v20 }
 0x343   :  { %v1599_v15 = vpop.eup %1598 }
 0x344   :  { %v379_v16 = vmul.f32 %v1599_v15, %v377_v12  ;;  %v1601_v21 = vpop.eup %1600  ;;  %v386_v38 = vsub.f32 1.0, %v1599_v15  ;;  %v700_v12 = vadd.f32 %v1332_v36, %v1759_v13 }
 0x345   :  { %v459_v22 = vadd.f32 1.0, %v1601_v21 }
 0x346   :  { %381 = vrot.lane.b32.xlu0 %v379_v16, %s1666_s22  ;;  %v387_v40 = vmul.f32 %v1776_v37, %v386_v38 }
 0x347   :  { %1602 = vrcp.f32 %v459_v22 }
 0x351   :  { %v1603_v23 = vpop.eup %1602 }
 0x352   :  { %v478_v37 = vsub.f32 1.0, %v1603_v23 }
 0x354   :  { %v479_v47 = vmul.f32 %v478_v37, %v1803_v55 }
 0x3a2   :  { %v469_v24 = vpop.permute.xlu1 %468 }
 0x3a3   :  { %v471_v25 = vmul.f32 %v1603_v23, %v469_v24 }
 0x3a5   :  { %473 = vrot.lane.b32.xlu1 %v471_v25, %s1666_s22  ;;  %v1573_v25 = vld [vmem:[%s2040_s4 + $0x58] sm:$0xff]  }
 0x3b8   :  { %v382_v27 = vpop.permute.xlu0 %381 }
 0x3b9   :  { %v384_v18 = vadd.f32 %v382_v27, %v358_v61 }
 0x3bb   :  { %1604 = vtanh.f32 %v384_v18 }
 0x3c5   :  { %v1605_v30 = vpop.eup %1604 }
 0x3c6   :  { %389 = vrot.lane.b32.xlu0 %v1605_v30, %s1667_s10  ;;  %v1345_v30 = vld [vmem:[%s2041_s5 + $0x28] sm:$0xff] }
 0x3ca   :  { %617 = vrot.lane.b32.xlu0 %v1320_v34, %s1665_s2 }
 0x417   :  { %v474_v31 = vpop.permute.xlu1 %473 }
 0x418   :  { %v476_v32 = vadd.f32 %v474_v31, %v454_v17 }
 0x41a   :  { %1606 = vtanh.f32 %v476_v32  ;;  %v1357_v32 = vld [vmem:[%s2041_s5 + $0x30] sm:$0xff] }
 0x424   :  { %v1607_v35 = vpop.eup %1606 }
 0x425   :  { %481 = vrot.lane.b32.xlu1 %v1607_v35, %s1667_s10 }
 0x429   :  { %709 = vrot.lane.b32.xlu1 %v1332_v36, %s1665_s2 }
 0x438   :  { %v390_v39 = vpop.permute.xlu0 %389 }
 0x439   :  { %v392_v41 = vmul.f32 %v1599_v15, %v390_v39  ;;  %v1575_v39 = vld [vmem:[%s2040_s4 + $0x60] sm:$0xff]  }
 0x43b   :  { %v1853_v42 = vadd.f32 %v392_v41, %v387_v40  ;;  %v1577_v41 = vld [vmem:[%s2040_s4 + $0x68] sm:$0xff]  }
 0x43c   :  { %v618_v51 = vpop.permute.xlu0 %617 }
 0x43d   :  { %v1860_v44 = vpack.c.bf16 %v1853_v42, %v1853_v42 }
 0x43f   :  { %1466 = vmatmul.mubr.msk.bf16.vlgmr.msra.gmra.mrb[4].mxu0 %vm164_vm1, %v1860_v44 }
 0x440   :  { %1478 = vmatpush3.bf16.msra.mxu0 %v1569_v43  ;;  %1481 = vmatprep.mubr.msk.bf16.mxu0 %vm1664_vm2, %v1663_v8 }
 0x441   :  { %1479 = vmatprep.subr.bf16.mxu0 %v1663_v8 }
 0x444   :  { %1480 = vmatpush3.bf16.msra.mxu0 %v1571_v45 }
 0x445   :  { %1493 = vmatprep.subr.bf16.mxu0 %v1663_v8 }
 0x497   :  { %v482_v46 = vpop.permute.xlu1 %481 }
 0x498   :  { %v484_v48 = vmul.f32 %v1603_v23, %v482_v46  ;;  %v1572_v23 = vld [vmem:[%s2040_s4 + $0x50] sm:$0xff]  }
 0x49a   :  { %v1872_v49 = vadd.f32 %v484_v48, %v479_v47 }
 0x49b   :  { %v710_v57 = vpop.permute.xlu1 %709 }
 0x49c   :  { %v486_v50 = vpack.c.bf16 %v1872_v49, %v1872_v49 }
 0x49e   :  { %1474 = vmatmul.mubr.msk.bf16.vlgmr.msra.gmra.mrb[20].mxu1 %vm164_vm1, %v486_v50  ;;  %1482 = vmatmul.mubr.msk.bf16.vlgmr.msra.gmra.mrb[8].mxu0 %vm164_vm1, %v486_v50 }
 0x49f   :  { %1489 = vmatprep.mubr.msk.bf16.mxu1 %vm1664_vm2, %v1663_v8  ;;  %1497 = vmatprep.mubr.msk.bf16.mxu0 %vm1664_vm2, %v1663_v8 }
 0x4a0   :  { %1486 = vmatpush3.bf16.msra.mxu1 %v1572_v23  ;;  %1494 = vmatpush3.bf16.msra.mxu0 %v1574_v26  ;;  %v1580_v23 = vld [vmem:[%s2039_s3 + $0x30] sm:$0xff]   ;;  %v1581_v26 = vld [vmem:[%s2039_s3 + $0x38] sm:$0xff]  }
 0x4a1   :  { %1487 = vmatprep.subr.bf16.mxu1 %v1663_v8  ;;  %1495 = vmatprep.subr.bf16.mxu0 %v1663_v8 }
 0x4a4   :  { %1488 = vmatpush3.bf16.msra.mxu1 %v1573_v25  ;;  %1496 = vmatpush3.bf16.msra.mxu0 %v1576_v29 }
 0x4a5   :  { %1501 = vmatprep.subr.bf16.mxu1 %v1663_v8  ;;  %1509 = vmatprep.subr.bf16.mxu0 %v1663_v8 }
 0x512   :  { %v546_v52 = vpop.f32.mrb[4].mxu0 }
 0x513   :  { %v620_v53 = vadd.f32 %v618_v51, %v546_v52  ;;  %v1467_v54 = vpop.f32.mrb[5].mxu0 }
 0x514   :  { %v549_v55 = vpop.f32.mrb[6].mxu0 }
 0x515   :  { %622 = vrot.lane.b32.xlu0 %v620_v53, %s1665_s2  ;;  %v1468_v56 = vpop.f32.mrb[7].mxu0 }
 0x571   :  { %v603_v58 = vpop.f32.mrb[20].mxu1  ;;  %v692_v59 = vpop.f32.mrb[8].mxu0 }
 0x572   :  { %v604_v60 = vadd.f32 %v1320_v34, %v603_v58  ;;  %v712_v61 = vadd.f32 %v710_v57, %v692_v59  ;;  %v1475_v62 = vpop.f32.mrb[21].mxu1  ;;  %v1483_v63 = vpop.f32.mrb[9].mxu0  ;;  %v701_v15 = vadd.f32 %v700_v12, %v692_v59 }
 0x573   :  { %v606_v0 = vpop.f32.mrb[22].mxu1  ;;  %v695_v1 = vpop.f32.mrb[10].mxu0 }
 0x574   :  { %v609_v2 = vadd.f32 %v604_v60, %v546_v52  ;;  %v1476_v3 = vpop.f32.mrb[23].mxu1  ;;  %714 = vrot.lane.b32.xlu1 %v712_v61, %s1665_s2  ;;  %v1484_v4 = vpop.f32.mrb[11].mxu0  ;;  %v1333_v16 = vmul.f32 -1.442695, %v701_v15 }
 0x576   :  { %v1324_v5 = vmul.f32 -1.442695, %v609_v2 }
 0x578   :  { %1608 = vpow2.f32 %v1324_v5 }
 0x582   :  { %v1609_v6 = vpop.eup %1608 }
 0x583   :  { %v613_v7 = vadd.f32 1.0, %v1609_v6 }
 0x585   :  { %1610 = vrcp.f32 %v613_v7 }
 0x586   :  { %1612 = vpow2.f32 %v1333_v16 }
 0x587   :  { %v623_v10 = vpop.permute.xlu0 %622 }
 0x58f   :  { %v1611_v9 = vpop.eup %1610 }
 0x590   :  { %v625_v11 = vmul.f32 %v1611_v9, %v623_v10  ;;  %v1613_v17 = vpop.eup %1612  ;;  %v632_v33 = vsub.f32 1.0, %v1611_v9 }
 0x591   :  { %v705_v19 = vadd.f32 1.0, %v1613_v17 }
 0x592   :  { %627 = vrot.lane.b32.xlu0 %v625_v11, %s1666_s22  ;;  %v633_v35 = vmul.f32 %v632_v33, %v1853_v42 }
 0x593   :  { %1614 = vrcp.f32 %v705_v19 }
 0x59d   :  { %v1615_v20 = vpop.eup %1614 }
 0x59e   :  { %v724_v42 = vsub.f32 1.0, %v1615_v20 }
 0x5a0   :  { %v725_v45 = vmul.f32 %v724_v42, %v1872_v49 }
 0x5e6   :  { %v715_v21 = vpop.permute.xlu1 %714 }
 0x5e7   :  { %v717_v22 = vmul.f32 %v1615_v20, %v715_v21 }
 0x5e9   :  { %719 = vrot.lane.b32.xlu1 %v717_v22, %s1666_s22  ;;  %v1579_v22 = vld [vmem:[%s2040_s4 + $0x78] sm:$0xff]  }
 0x604   :  { %v628_v24 = vpop.permute.xlu0 %627 }
 0x605   :  { %v630_v13 = vadd.f32 %v628_v24, %v604_v60 }
 0x607   :  { %1616 = vtanh.f32 %v630_v13 }
 0x611   :  { %v1617_v27 = vpop.eup %1616 }
 0x612   :  { %635 = vrot.lane.b32.xlu0 %v1617_v27, %s1667_s10  ;;  %v1370_v27 = vld [vmem:[%s2041_s5 + $0x38] sm:$0xff] }
 0x616   :  { %863 = vrot.lane.b32.xlu0 %v1345_v30, %s1665_s2 }
 0x65b   :  { %v720_v18 = vpop.permute.xlu1 %719 }
 0x65c   :  { %v722_v28 = vadd.f32 %v720_v18, %v700_v12 }
 0x65e   :  { %1618 = vtanh.f32 %v722_v28 }
 0x668   :  { %v1619_v31 = vpop.eup %1618 }
 0x669   :  { %727 = vrot.lane.b32.xlu1 %v1619_v31, %s1667_s10 }
 0x66d   :  { %955 = vrot.lane.b32.xlu1 %v1357_v32, %s1665_s2 }
 0x684   :  { %v636_v34 = vpop.permute.xlu0 %635 }
 0x685   :  { %v638_v36 = vmul.f32 %v1611_v9, %v636_v34  ;;  %v946_v9 = vadd.f32 %v1357_v32, %v1761_v14 }
 0x687   :  { %v1914_v38 = vadd.f32 %v638_v36, %v633_v35 }
 0x688   :  { %v864_v48 = vpop.permute.xlu0 %863 }
 0x689   :  { %v1921_v40 = vpack.c.bf16 %v1914_v38, %v1914_v38 }
 0x68b   :  { %1490 = vmatmul.mubr.msk.bf16.vlgmr.msra.gmra.mrb[24].mxu1 %vm164_vm1, %v1921_v40 }
 0x68c   :  { %1502 = vmatpush3.bf16.msra.mxu1 %v1575_v39  ;;  %1505 = vmatprep.mubr.msk.bf16.mxu1 %vm1664_vm2, %v1663_v8 }
 0x68d   :  { %1503 = vmatprep.subr.bf16.mxu1 %v1663_v8 }
 0x690   :  { %1504 = vmatpush3.bf16.msra.mxu1 %v1577_v41 }
 0x691   :  { %1517 = vmatprep.subr.bf16.mxu1 %v1663_v8 }
 0x6db   :  { %v728_v43 = vpop.permute.xlu1 %727 }
 0x6dc   :  { %v730_v37 = vmul.f32 %v1615_v20, %v728_v43  ;;  %v1578_v20 = vld [vmem:[%s2040_s4 + $0x70] sm:$0xff]  }
 0x6de   :  { %v1933_v46 = vadd.f32 %v730_v37, %v725_v45 }
 0x6df   :  { %v956_v54 = vpop.permute.xlu1 %955 }
 0x6e0   :  { %v732_v47 = vpack.c.bf16 %v1933_v46, %v1933_v46 }
 0x6e2   :  { %1498 = vmatmul.mubr.msk.bf16.vlgmr.msra.gmra.mrb[12].mxu0 %vm164_vm1, %v732_v47  ;;  %1506 = vmatmul.mubr.msk.bf16.vlgmr.msra.gmra.mrb[28].mxu1 %vm164_vm1, %v732_v47 }
 0x6e3   :  { %1513 = vmatprep.mubr.msk.bf16.mxu0 %vm1664_vm2, %v1663_v8  ;;  %1521 = vmatprep.mubr.msk.bf16.mxu1 %vm1664_vm2, %v1663_v8 }
 0x6e4   :  { %1510 = vmatpush3.bf16.msra.mxu0 %v1578_v20  ;;  %1518 = vmatpush3.bf16.msra.mxu1 %v1580_v23 }
 0x6e5   :  { %1511 = vmatprep.subr.bf16.mxu0 %v1663_v8  ;;  %1519 = vmatprep.subr.bf16.mxu1 %v1663_v8 }
 0x6e8   :  { %1512 = vmatpush3.bf16.msra.mxu0 %v1579_v22  ;;  %1520 = vmatpush3.bf16.msra.mxu1 %v1581_v26 }
 0x6e9   :  { %1525 = vmatprep.subr.bf16.mxu0 %v1663_v8 }
 0x75e   :  { %v792_v50 = vpop.f32.mrb[24].mxu1 }
 0x75f   :  { %v866_v51 = vadd.f32 %v864_v48, %v792_v50  ;;  %v1491_v49 = vpop.f32.mrb[25].mxu1 }
 0x760   :  { %v795_v52 = vpop.f32.mrb[26].mxu1 }
 0x761   :  { %v1492_v53 = vpop.f32.mrb[27].mxu1  ;;  %868 = vrot.lane.b32.xlu0 %v866_v51, %s1665_s2 }
 0x7b5   :  { %v938_v55 = vpop.f32.mrb[28].mxu1  ;;  %v849_v56 = vpop.f32.mrb[12].mxu0 }
 0x7b6   :  { %v958_v57 = vadd.f32 %v956_v54, %v938_v55  ;;  %v850_v58 = vadd.f32 %v1345_v30, %v849_v56  ;;  %v1499_v59 = vpop.f32.mrb[13].mxu0  ;;  %v1507_v60 = vpop.f32.mrb[29].mxu1  ;;  %v947_v10 = vadd.f32 %v946_v9, %v938_v55 }
 0x7b7   :  { %v852_v61 = vpop.f32.mrb[14].mxu0  ;;  %v941_v62 = vpop.f32.mrb[30].mxu1 }
 0x7b8   :  { %v855_v63 = vadd.f32 %v850_v58, %v792_v50  ;;  %v1508_v0 = vpop.f32.mrb[31].mxu1  ;;  %960 = vrot.lane.b32.xlu1 %v958_v57, %s1665_s2  ;;  %v1500_v1 = vpop.f32.mrb[15].mxu0  ;;  %v1358_v11 = vmul.f32 -1.442695, %v947_v10  ;;  %v1582_v62 = vld [vmem:[%s2042_s6] sm:$0xff]  }
 0x7b9   :  { %v1585_v1 = vld [vmem:[%s2042_s6 + $0x18] sm:$0xff]  }
 0x7ba   :  { %v1349_v2 = vmul.f32 -1.442695, %v855_v63  ;;  %v1583_v63 = vld [vmem:[%s2042_s6 + $0x8] sm:$0xff]  }
 0x7bc   :  { %1620 = vpow2.f32 %v1349_v2  ;;  %v1586_v2 = vld [vmem:[%s2042_s6 + $0x20] sm:$0xff]  }
 0x7c6   :  { %v1621_v3 = vpop.eup %1620 }
 0x7c7   :  { %v859_v4 = vadd.f32 1.0, %v1621_v3  ;;  %v1587_v3 = vld [vmem:[%s2042_s6 + $0x28] sm:$0xff]  }
 0x7c9   :  { %1622 = vrcp.f32 %v859_v4  ;;  %v1588_v4 = vld [vmem:[%s2042_s6 + $0x30] sm:$0xff]  }
 0x7ca   :  { %1624 = vpow2.f32 %v1358_v11 }
 0x7d3   :  { %v1623_v5 = vpop.eup %1622  ;;  %v869_v6 = vpop.permute.xlu0 %868 }
 0x7d4   :  { %v871_v7 = vmul.f32 %v1623_v5, %v869_v6  ;;  %v1625_v12 = vpop.eup %1624  ;;  %v878_v28 = vsub.f32 1.0, %v1623_v5 }
 0x7d5   :  { %v951_v15 = vadd.f32 1.0, %v1625_v12 }
 0x7d6   :  { %873 = vrot.lane.b32.xlu0 %v871_v7, %s1666_s22  ;;  %v879_v30 = vmul.f32 %v878_v28, %v1914_v38 }
 0x7d7   :  { %1626 = vrcp.f32 %v951_v15 }
 0x7e1   :  { %v1627_v16 = vpop.eup %1626 }
 0x7e2   :  { %v970_v34 = vsub.f32 1.0, %v1627_v16 }
 0x7e4   :  { %v971_v36 = vmul.f32 %v970_v34, %v1933_v46 }
 0x82a   :  { %v961_v17 = vpop.permute.xlu1 %960 }
 0x82b   :  { %v963_v19 = vmul.f32 %v1627_v16, %v961_v17 }
 0x82d   :  { %965 = vrot.lane.b32.xlu1 %v963_v19, %s1666_s22 }
 0x848   :  { %v874_v21 = vpop.permute.xlu0 %873 }
 0x849   :  { %v876_v14 = vadd.f32 %v874_v21, %v850_v58  ;;  %v1375_v21 = vld [vmem:[%s2043_s7] ss:$0 sm:$0xff] }
 0x84b   :  { %1628 = vtanh.f32 %v876_v14 }
 0x855   :  { %v1629_v24 = vpop.eup %1628 }
 0x856   :  { %881 = vrot.lane.b32.xlu0 %v1629_v24, %s1667_s10 }
 0x85a   :  { %1109 = vrot.lane.b32.xlu0 %v1370_v27, %s1665_s2 }
 0x89f   :  { %v966_v13 = vpop.permute.xlu1 %965 }
 0x8a0   :  { %v968_v25 = vadd.f32 %v966_v13, %v946_v9 }
 0x8a2   :  { %1630 = vtanh.f32 %v968_v25 }
 0x8ac   :  { %v1631_v18 = vpop.eup %1630 }
 0x8ad   :  { %973 = vrot.lane.b32.xlu1 %v1631_v18, %s1667_s10 }
 0x8c8   :  { %v882_v29 = vpop.permute.xlu0 %881 }
 0x8c9   :  { %v884_v31 = vmul.f32 %v1623_v5, %v882_v29  ;;  %v1589_v5 = vld [vmem:[%s2042_s6 + $0x38] sm:$0xff]  }
 0x8cb   :  { %v1970_v32 = vadd.f32 %v884_v31, %v879_v30 }
 0x8cc   :  { %v1110_v38 = vpop.permute.xlu0 %1109 }
 0x8cd   :  { %v886_v33 = vpack.c.bf16 %v1970_v32, %v1970_v32 }
 0x8cf   :  { %1514 = vmatmul.mubr.msk.bf16.vlgmr.msra.gmra.mrb[16].mxu0 %vm164_vm1, %v886_v33 }
 0x8d0   :  { %1541 = vmatprep.mubr.msk.bf16.mxu0 %vm1664_vm2, %v1663_v8  ;;  %1526 = vmatpush3.bf16.msra.mxu0 %v1582_v62 }
 0x8d1   :  { %1527 = vmatprep.subr.bf16.mxu0 %v1663_v8 }
 0x8d4   :  { %1528 = vmatpush3.bf16.msra.mxu0 %v1583_v63 }
 0x8d5   :  { %1529 = vmatprep.subr.bf16.mxu0 %v1663_v8 }
 0x91f   :  { %v974_v35 = vpop.permute.xlu1 %973 }
 0x920   :  { %v976_v39 = vmul.f32 %v1627_v16, %v974_v35 }
 0x922   :  { %v977_v41 = vadd.f32 %v976_v39, %v971_v36 }
 0x924   :  { %v978_v42 = vpack.c.bf16 %v977_v41, %v977_v41 }
 0x926   :  { %1522 = vmatmul.mubr.msk.bf16.vlgmr.msra.gmra.mrb[32].mxu1 %vm164_vm1, %v978_v42 }
 0x9a2   :  { %v1038_v43 = vpop.f32.mrb[16].mxu0 }
 0x9a3   :  { %v1112_v45 = vadd.f32 %v1110_v38, %v1038_v43  ;;  %v1515_v37 = vpop.f32.mrb[17].mxu0 }
 0x9a4   :  { %v1041_v47 = vpop.f32.mrb[18].mxu0 }
 0x9a5   :  { %1114 = vrot.lane.b32.xlu1 %v1112_v45, %s1665_s2  ;;  %v1516_v48 = vpop.f32.mrb[19].mxu0 }
 0x9f9   :  { %v1095_v50 = vpop.f32.mrb[32].mxu1 }
 0x9fa   :  { %v1096_v51 = vadd.f32 %v1370_v27, %v1095_v50  ;;  %v1523_v49 = vpop.f32.mrb[33].mxu1 }
 0x9fb   :  { %v1098_v52 = vpop.f32.mrb[34].mxu1 }
 0x9fc   :  { %v1101_v53 = vadd.f32 %v1096_v51, %v1038_v43  ;;  %v1524_v54 = vpop.f32.mrb[35].mxu1 }
 0x9fe   :  { %v1374_v46 = vmul.f32 -1.442695, %v1101_v53 }
 0xa00   :  { %1632 = vpow2.f32 %v1374_v46 }
 0xa0a   :  { %v1633_v55 = vpop.eup %1632 }
 0xa0b   :  { %v1105_v56 = vadd.f32 1.0, %v1633_v55 }
 0xa0d   :  { %1634 = vrcp.f32 %v1105_v56 }
 0xa17   :  { %v1635_v57 = vpop.eup %1634  ;;  %v1115_v58 = vpop.permute.xlu1 %1114 }
 0xa18   :  { %v1117_v59 = vmul.f32 %v1635_v57, %v1115_v58  ;;  %v1124_v6 = vsub.f32 1.0, %v1635_v57 }
 0xa1a   :  { %1119 = vrot.lane.b32.xlu0 %v1117_v59, %s1666_s22  ;;  %v1125_v9 = vmul.f32 %v1124_v6, %v1970_v32 }
 0xa1e   :  { %1134 = vrot.lane.b32.xlu0 %v1921_v40, %s1666_s22  ;;  %v1584_v40 = vld [vmem:[%s2042_s6 + $0x10] sm:$0xff]  }
 0xa1f   :  { %1530 = vmatpush3.bf16.msra.mxu0 %v1584_v40 }
 0xa20   :  { %1531 = vmatprep.subr.bf16.mxu0 %v1663_v8 }
 0xa23   :  { %1532 = vmatpush3.bf16.msra.mxu0 %v1585_v1 }
 0xa24   :  { %1533 = vmatprep.subr.bf16.mxu0 %v1663_v8 }
 0xa27   :  { %1534 = vmatpush3.bf16.msra.mxu0 %v1586_v2 }
 0xa28   :  { %1535 = vmatprep.subr.bf16.mxu0 %v1663_v8 }
 0xa2b   :  { %1536 = vmatpush3.bf16.msra.mxu0 %v1587_v3 }
 0xa2c   :  { %1537 = vmatprep.subr.bf16.mxu0 %v1663_v8 }
 0xa2f   :  { %1538 = vmatpush3.bf16.msra.mxu0 %v1588_v4 }
 0xa30   :  { %1539 = vmatprep.subr.bf16.mxu0 %v1663_v8 }
 0xa33   :  { %1540 = vmatpush3.bf16.msra.mxu0 %v1589_v5 }
 0xa8c   :  { %v1120_v60 = vpop.permute.xlu0 %1119 }
 0xa8d   :  { %v1122_v61 = vadd.f32 %v1120_v60, %v1096_v51 }
 0xa8f   :  { %1636 = vtanh.f32 %v1122_v61 }
 0xa90   :  { %v1135_v15 = vpop.permute.xlu0 %1134 }
 0xa91   :  { %v1143_v17 = vsel %vm164_vm1, %v1860_v44, %v1135_v15 }
 0xa99   :  { %v1637_v0 = vpop.eup %1636 }
 0xa9a   :  { %1127 = vrot.lane.b32.xlu1 %v1637_v0, %s1667_s10 }
 0xa9e   :  { %1137 = vrot.lane.b32.xlu1 %v886_v33, %s1667_s10 }
 0xb0c   :  { %v1128_v7 = vpop.permute.xlu1 %1127 }
 0xb0d   :  { %v1130_v10 = vmul.f32 %v1635_v57, %v1128_v7 }
 0xb0f   :  { %v1131_v11 = vadd.f32 %v1130_v10, %v1125_v9 }
 0xb10   :  { %v1138_v16 = vpop.permute.xlu1 %1137 }
 0xb11   :  { %v1132_v12 = vpack.c.bf16 %v1131_v11, %v1131_v11  ;;  %v1146_v19 = vsel %vm1144_vm3, %v1143_v17, %v1138_v16 }
 0xb13   :  { %1140 = vrot.lane.b32.xlu0 %v1132_v12, %s1665_s2  ;;  %s1638_s2 = scalar_lea.vmem %s1270_s30, 128 }
 0xb14   :  { %p1639_p0 = scmp.ne.s32.totalorder %s1270_s30, %s1638_s2  ;;  %p1644_p2 = scmp.lt.s32.totalorder %s1638_s2, %s1638_s2 }
 0xb16   :  { %p1645_p3 = por %p1644_p2, %p1643_p1 }
 0xb18   :  { %p1646_p4 = pnand %p1645_p3, %p1639_p0 }
 0xb85   :  { %v1141_v20 = vpop.permute.xlu0 %1140 }
 0xb86   :  { %v1149_v8 = vsel %vm1147_vm4, %v1146_v19, %v1141_v20 }
 0xb87   :  { %1542 = vmatmul.mubr.bf16.vlgmr.msra.gmra.mrb[20].mxu0 %v1149_v8 }
 0xc5a   :  { %v1256_v14 = vpop.f32.mrb[20].mxu0 }
 0xc5b   :  { %v1257_v22 = vadd.f32 %v1375_v21, %v1256_v14  ;;  %v1543_v23 = vpop.f32.mrb[21].mxu0 }
 0xc5c   :  { %v1259_v24 = vpop.f32.mrb[22].mxu0 }
 0xc5d   :  { %1262 = vst.msk [vmem:[#allocation2] sm:$0xff] %vm164_vm1, %v1257_v22  ;;  %v1544_v13 = vpop.f32.mrb[23].mxu0 }
 0xc5e   :  { %1649 = shalt.err (!%p1646_p4)
}
 0xc5f   :  { %s1650_s7 = scalar_lea.hbm %s2044_s8, 128 }
 0xc60   :  { %p1651_p5 = scmp.ne.s32.totalorder %s2044_s8, %s1650_s7  ;;  %p1654_p6 = scmp.lt.u32.totalorder %s1650_s7, %s2044_s8 }
 0xc62   :  { %p1656_p7 = pnand %p1654_p6, %p1651_p5 }
 0xc64   :  { %1659 = shalt.err (!%p1656_p7)
}
 0xc65   :  { %1272 = dma.vmem_to_hbm [thread:$0]  %s1270_s30, 128, %s2044_s8, [#allocation3]  }
 0xc66   :  { %1660 = dma.done.wait [#allocation3], 128  }
 0xc67   :  { %1661 = vsyncadd [#allocation3], 4294967168 }
 0xc68   :  { %1276 = vsyncpa [#allocation3], 1 }

</bundles_post_ra>
